<compile_context>
chip_gen: v7x
topology: tpu7x:2x2x1
jax: 0.10.0
libtpu: 0.0.40
codegen_flags: <defaults>
</compile_context>

<pallas_src>
import functools

import jax
import jax.numpy as jnp
from jax.experimental import pallas as pl
from jax.experimental.pallas import tpu as pltpu

LN_EPS = 1e-5


def _round_up(v, m):
    return ((v + m - 1) // m) * m


def _adapter_kernel(x_ref, res_ref, g_ref, b_ref, wd_ref, bd_ref, wu_ref, bu_ref,
                    o_ref, *, scale):
    # ---- LayerNorm over the embedding dim (adapter_layernorm_option == 'in').
    # One-pass statistics in f32 (v5e VPU has no bf16 path).
    x = x_ref[...].astype(jnp.float32)
    inv_d = 1.0 / x.shape[-1]
    mean = jnp.sum(x, axis=-1, keepdims=True) * inv_d
    ex2 = jnp.sum(x * x, axis=-1, keepdims=True) * inv_d
    var = jnp.maximum(ex2 - mean * mean, 0.0)
    xn = (x - mean) * jax.lax.rsqrt(var + LN_EPS)
    xn = xn * g_ref[...].astype(jnp.float32) + b_ref[...].astype(jnp.float32)

    # ---- down_proj + ReLU. Feed the MXU in the weights' native dtype
    # (bf16 stays bf16); for f32 weights pin HIGHEST precision so numerics
    # match an f32 reference. Accumulate in f32 either way.
    prec_d = (jax.lax.Precision.HIGHEST
              if jnp.dtype(wd_ref.dtype) == jnp.float32 else jax.lax.Precision.DEFAULT)
    down = jnp.dot(xn.astype(wd_ref.dtype), wd_ref[...],
                   preferred_element_type=jnp.float32, precision=prec_d)
    down = jnp.maximum(down + bd_ref[...].astype(jnp.float32), 0.0)

    # dropout: nn.Dropout in eval mode is the identity (deterministic forward).

    # ---- up_proj, scale, residual add (f32), downcast on store.
    prec_u = (jax.lax.Precision.HIGHEST
              if jnp.dtype(wu_ref.dtype) == jnp.float32 else jax.lax.Precision.DEFAULT)
    up = jnp.dot(down.astype(wu_ref.dtype), wu_ref[...],
                 preferred_element_type=jnp.float32, precision=prec_u)
    up = (up + bu_ref[...].astype(jnp.float32)) * scale
    o_ref[...] = (up + res_ref[...].astype(jnp.float32)).astype(o_ref.dtype)


def adapter_forward(x, residual, gamma, beta, w_down, b_down, w_up, b_up,
                    *, scale, tile_n=None):
    """x, residual: (B, T, D).  w_down: (D, H), w_up: (H, D)."""
    B, T, D = x.shape
    H = w_down.shape[1]
    assert D % 128 == 0, "n_embd must be a multiple of 128 (lane-dense output)"
    N = B * T

    # ---- generation-aware VMEM budget.
    try:
        vmem_cap = int(pltpu.get_tpu_info().vmem_capacity_bytes)
    except Exception:
        vmem_cap = 64 << 20  # conservative fallback
    small_vmem = vmem_cap <= (80 << 20)          # v7x-like: 64 MiB per TensorCore
    if small_vmem:
        budget = min(40 << 20, (vmem_cap * 5) // 8)
        tile_cap = 1024
    else:
        budget = (vmem_cap * 3) // 4             # ~96 MiB on 128 MiB parts
        tile_cap = 2048

    io_item = jnp.dtype(x.dtype).itemsize
    w_item = jnp.dtype(w_down.dtype).itemsize
    g_item = jnp.dtype(gamma.dtype).itemsize
    be_item = jnp.dtype(beta.dtype).itemsize
    bd_item = jnp.dtype(b_down.dtype).itemsize
    bu_item = jnp.dtype(b_up.dtype).itemsize

    x2 = x.reshape(N, D)
    r2 = residual.reshape(N, D)
    g2 = gamma.reshape(1, D)
    be2 = beta.reshape(1, D)
    bd2 = b_down.reshape(1, H)
    bu2 = b_up.reshape(1, D)

    param_bytes_1x = ((D * H + H * D) * w_item + D * g_item + D * be_item
                      + H * bd_item + D * bu_item)

    def tile_bytes(t):
        io = 3 * 2 * t * D * io_item             # x, residual, out (double-buffered)
        tmp = t * (3 * D + 2 * H) * 4            # in-kernel f32 temporaries (approx)
        return io + tmp

    def pick_tile(param_buf_factor):
        params = param_buf_factor * param_bytes_1x
        t = tile_n if tile_n is not None else tile_cap
        t = min(t, _round_up(N, 16))
        t = max(16, (t // 16) * 16)
        while t > 16 and params + tile_bytes(t) > budget:
            t = max(16, ((t // 2) // 16) * 16)
        if small_vmem and N >= 32:
            # Keep >= 2 grid steps so the "parallel" axis can use both TensorCores.
            t = min(t, _round_up((N + 1) // 2, 16))
        return t, params

    def run(single_buffer_consts):
        tn, params = pick_tile(1 if single_buffer_consts else 2)
        grid = pl.cdiv(N, tn)
        vmem_limit = int(min(max(budget, params + tile_bytes(tn) + (4 << 20)),
                             (vmem_cap * 9) // 10))

        row_spec = pl.BlockSpec((tn, D), lambda i: (i, 0))
        if single_buffer_consts:
            def const(r, c):
                return pl.BlockSpec((r, c), lambda i: (0, 0),
                                    pipeline_mode=pl.Buffered(1))
        else:
            def const(r, c):
                return pl.BlockSpec((r, c), lambda i: (0, 0))

        cost = pl.CostEstimate(
            flops=4 * N * D * H,                              # two matmuls
            transcendentals=N,                                # rsqrt per row
            bytes_accessed=3 * N * D * io_item + param_bytes_1x,
        )

        out = pl.pallas_call(
            functools.partial(_adapter_kernel, scale=float(scale)),
            out_shape=jax.ShapeDtypeStruct((N, D), x.dtype),
            grid_spec=pltpu.PrefetchScalarGridSpec(
                num_scalar_prefetch=0,
                grid=(grid,),
                in_specs=[
                    row_spec,            # x
                    row_spec,            # residual
                    const(1, D),         # ln gamma
                    const(1, D),         # ln beta
                    const(D, H),         # W_down
                    const(1, H),         # b_down
                    const(H, D),         # W_up
                    const(1, D),         # b_up
                ],
                out_specs=row_spec,
            ),
            compiler_params=pltpu.CompilerParams(
                dimension_semantics=("parallel",),
                vmem_limit_bytes=vmem_limit,
            ),
            cost_estimate=cost,
        )(x2, r2, g2, be2, w_down, bd2, w_up, bu2)
        return jax.block_until_ready(out)

    try:
        out = run(True)          # single-buffered constant params (pl.Buffered(1))
    except Exception:
        out = run(False)         # fallback: previously-verified double-buffered config

    return out.reshape(B, T, D)


def adapter_ref(x, residual, gamma, beta, w_down, b_down, w_up, b_up, *, scale):
    xf = x.astype(jnp.float32)
    mean = jnp.mean(xf, axis=-1, keepdims=True)
    var = jnp.mean((xf - mean) ** 2, axis=-1, keepdims=True)
    xn = (xf - mean) * jax.lax.rsqrt(var + LN_EPS) * gamma + beta
    down = jnp.maximum(
        jnp.dot(xn, w_down, precision=jax.lax.Precision.HIGHEST) + b_down, 0.0)
    up = (jnp.dot(down, w_up, precision=jax.lax.Precision.HIGHEST) + b_up) * scale
    return (up + residual.astype(jnp.float32)).astype(x.dtype)


if __name__ == "__main__":
    # config: n_embd=128 (lane-dense), adapter_bottleneck_dim=32,
    #         adapter_scale=0.5, adapter_layernorm_option='in',
    #         adapter_dropout treated as eval-identity.
    B, T, D, H = 2, 64, 128, 32
    scale = 0.5

    key = jax.random.PRNGKey(0)
    kx, kg, kb, kwd, kbd, kwu, kbu = jax.random.split(key, 7)

    x = jax.random.normal(kx, (B, T, D), dtype=jnp.float32)
    # Deterministic synthetic parameters (nonzero so the whole path is exercised;
    # the PyTorch init zeroes up_proj, which would make output == x).
    gamma = 1.0 + 0.1 * jax.random.normal(kg, (D,), dtype=jnp.float32)
    beta = 0.1 * jax.random.normal(kb, (D,), dtype=jnp.float32)
    w_down = jax.random.normal(kwd, (D, H), dtype=jnp.float32) * 0.1
    b_down = 0.05 * jax.random.normal(kbd, (H,), dtype=jnp.float32)
    w_up = jax.random.normal(kwu, (H, D), dtype=jnp.float32) * 0.1
    b_up = 0.05 * jax.random.normal(kbu, (D,), dtype=jnp.float32)

    out = adapter_forward(x, x, gamma, beta, w_down, b_down, w_up, b_up, scale=scale)
    out = jax.block_until_ready(out)

    ref = adapter_ref(x, x, gamma, beta, w_down, b_down, w_up, b_up, scale=scale)
    assert out.shape == (B, T, D)
    assert jnp.allclose(out, ref, atol=5e-5, rtol=5e-5), "mismatch vs reference"

    print("KERNEL_OK")
</pallas_src>

<mosaic_0001>
module attributes {stable_mosaic.version = 11 : i64} {
  func.func @_adapter_kernel(%arg0: i32, %arg1: memref<64x128xf32, #tpu.memory_space<vmem>>, %arg2: memref<64x128xf32, #tpu.memory_space<vmem>>, %arg3: memref<1x128xf32, #tpu.memory_space<vmem>>, %arg4: memref<1x128xf32, #tpu.memory_space<vmem>>, %arg5: memref<128x32xf32, #tpu.memory_space<vmem>>, %arg6: memref<1x32xf32, #tpu.memory_space<vmem>>, %arg7: memref<32x128xf32, #tpu.memory_space<vmem>>, %arg8: memref<1x128xf32, #tpu.memory_space<vmem>>, %arg9: memref<64x128xf32, #tpu.memory_space<vmem>>) attributes {dimension_semantics = [#tpu.dimension_semantics<parallel>], iteration_bounds = array<i64: 2>, scalar_prefetch = 0 : i64, scratch_operands = 0 : i64, tpu.core_type = #tpu.core_type<tc>, window_params = [{transform_indices = @transform_0, window_bounds = array<i64: 64, 128>}, {transform_indices = @transform_1, window_bounds = array<i64: 64, 128>}, {pipeline_mode = #tpu.pipeline_mode<synchronous>, transform_indices = @transform_2, window_bounds = array<i64: 1, 128>}, {pipeline_mode = #tpu.pipeline_mode<synchronous>, transform_indices = @transform_3, window_bounds = array<i64: 1, 128>}, {pipeline_mode = #tpu.pipeline_mode<synchronous>, transform_indices = @transform_4, window_bounds = array<i64: 128, 32>}, {pipeline_mode = #tpu.pipeline_mode<synchronous>, transform_indices = @transform_5, window_bounds = array<i64: 1, 32>}, {pipeline_mode = #tpu.pipeline_mode<synchronous>, transform_indices = @transform_6, window_bounds = array<i64: 32, 128>}, {pipeline_mode = #tpu.pipeline_mode<synchronous>, transform_indices = @transform_7, window_bounds = array<i64: 1, 128>}, {transform_indices = @transform_8, window_bounds = array<i64: 64, 128>}]} {
    %c0 = arith.constant 0 : index
    %c0_0 = arith.constant 0 : index
    %0 = vector.load %arg1[%c0, %c0_0] : memref<64x128xf32, #tpu.memory_space<vmem>>, vector<64x128xf32>
    %cst = arith.constant dense<0.000000e+00> : vector<64xf32>
    %1 = vector.multi_reduction <add>, %0, %cst [1] : vector<64x128xf32> to vector<64xf32>
    %2 = vector.shape_cast %1 : vector<64xf32> to vector<64x1xf32>
    %cst_1 = arith.constant 7.812500e-03 : f32
    %3 = vector.broadcast %cst_1 : f32 to vector<64x1xf32>
    %4 = arith.mulf %2, %3 : vector<64x1xf32>
    %5 = arith.mulf %0, %0 : vector<64x128xf32>
    %cst_2 = arith.constant dense<0.000000e+00> : vector<64xf32>
    %6 = vector.multi_reduction <add>, %5, %cst_2 [1] : vector<64x128xf32> to vector<64xf32>
    %7 = vector.shape_cast %6 : vector<64xf32> to vector<64x1xf32>
    %cst_3 = arith.constant 7.812500e-03 : f32
    %8 = vector.broadcast %cst_3 : f32 to vector<64x1xf32>
    %9 = arith.mulf %7, %8 : vector<64x1xf32>
    %10 = arith.mulf %4, %4 : vector<64x1xf32>
    %11 = arith.subf %9, %10 : vector<64x1xf32>
    %cst_4 = arith.constant 0.000000e+00 : f32
    %12 = vector.broadcast %cst_4 : f32 to vector<64x1xf32>
    %13 = arith.maximumf %11, %12 : vector<64x1xf32>
    %14 = vector.broadcast %4 : vector<64x1xf32> to vector<64x128xf32>
    %15 = arith.subf %0, %14 : vector<64x128xf32>
    %cst_5 = arith.constant 9.99999974E-6 : f32
    %16 = vector.broadcast %cst_5 : f32 to vector<64x1xf32>
    %17 = arith.addf %13, %16 : vector<64x1xf32>
    %18 = math.rsqrt %17 : vector<64x1xf32>
    %19 = vector.broadcast %18 : vector<64x1xf32> to vector<64x128xf32>
    %20 = arith.mulf %15, %19 : vector<64x128xf32>
    %c0_6 = arith.constant 0 : index
    %c0_7 = arith.constant 0 : index
    %21 = vector.load %arg3[%c0_6, %c0_7] : memref<1x128xf32, #tpu.memory_space<vmem>>, vector<1x128xf32>
    %22 = vector.broadcast %21 : vector<1x128xf32> to vector<64x128xf32>
    %23 = arith.mulf %20, %22 : vector<64x128xf32>
    %c0_8 = arith.constant 0 : index
    %c0_9 = arith.constant 0 : index
    %24 = vector.load %arg4[%c0_8, %c0_9] : memref<1x128xf32, #tpu.memory_space<vmem>>, vector<1x128xf32>
    %25 = vector.broadcast %24 : vector<1x128xf32> to vector<64x128xf32>
    %26 = arith.addf %23, %25 : vector<64x128xf32>
    %c0_10 = arith.constant 0 : index
    %c0_11 = arith.constant 0 : index
    %27 = vector.load %arg5[%c0_10, %c0_11] : memref<128x32xf32, #tpu.memory_space<vmem>>, vector<128x32xf32>
    %cst_12 = arith.constant dense<0.000000e+00> : vector<64x32xf32>
    %28 = tpu.matmul %26, %27, %cst_12 {dimension_numbers = #tpu.dot_dimension_numbers<[1], [0], [0], [1], [0, 0, 1, 1], [], []>, precision = #tpu.contract_precision<fp32>} : vector<64x128xf32>, vector<128x32xf32>, vector<64x32xf32> -> vector<64x32xf32>
    %c0_13 = arith.constant 0 : index
    %c0_14 = arith.constant 0 : index
    %29 = vector.load %arg6[%c0_13, %c0_14] : memref<1x32xf32, #tpu.memory_space<vmem>>, vector<1x32xf32>
    %30 = vector.broadcast %29 : vector<1x32xf32> to vector<64x32xf32>
    %31 = arith.addf %28, %30 : vector<64x32xf32>
    %cst_15 = arith.constant 0.000000e+00 : f32
    %32 = vector.broadcast %cst_15 : f32 to vector<64x32xf32>
    %33 = arith.maximumf %31, %32 : vector<64x32xf32>
    %c0_16 = arith.constant 0 : index
    %c0_17 = arith.constant 0 : index
    %34 = vector.load %arg7[%c0_16, %c0_17] : memref<32x128xf32, #tpu.memory_space<vmem>>, vector<32x128xf32>
    %cst_18 = arith.constant dense<0.000000e+00> : vector<64x128xf32>
    %35 = tpu.matmul %33, %34, %cst_18 {dimension_numbers = #tpu.dot_dimension_numbers<[1], [0], [0], [1], [0, 0, 1, 1], [], []>, precision = #tpu.contract_precision<fp32>} : vector<64x32xf32>, vector<32x128xf32>, vector<64x128xf32> -> vector<64x128xf32>
    %c0_19 = arith.constant 0 : index
    %c0_20 = arith.constant 0 : index
    %36 = vector.load %arg8[%c0_19, %c0_20] : memref<1x128xf32, #tpu.memory_space<vmem>>, vector<1x128xf32>
    %37 = vector.broadcast %36 : vector<1x128xf32> to vector<64x128xf32>
    %38 = arith.addf %35, %37 : vector<64x128xf32>
    %cst_21 = arith.constant 5.000000e-01 : f32
    %39 = vector.broadcast %cst_21 : f32 to vector<64x128xf32>
    %40 = arith.mulf %38, %39 : vector<64x128xf32>
    %c0_22 = arith.constant 0 : index
    %c0_23 = arith.constant 0 : index
    %41 = vector.load %arg2[%c0_22, %c0_23] : memref<64x128xf32, #tpu.memory_space<vmem>>, vector<64x128xf32>
    %42 = arith.addf %40, %41 : vector<64x128xf32>
    %c0_24 = arith.constant 0 : index
    %c0_25 = arith.constant 0 : index
    %43 = vector.load %arg9[%c0_24, %c0_25] : memref<64x128xf32, #tpu.memory_space<vmem>>, vector<64x128xf32>
    tpu.vector_store %arg9[%c0_24, %c0_25], %42 {strides = array<i32>} : memref<64x128xf32, #tpu.memory_space<vmem>>, vector<64x128xf32>,
    return
  }
  func.func @transform_0(%arg0: i32) -> (i32, i32) {
    %c0_i32 = arith.constant 0 : i32
    %c0_i32_0 = arith.constant 0 : i32
    return %arg0, %c0_i32 : i32, i32
  }
  func.func @transform_1(%arg0: i32) -> (i32, i32) {
    %c0_i32 = arith.constant 0 : i32
    %c0_i32_0 = arith.constant 0 : i32
    return %arg0, %c0_i32 : i32, i32
  }
  func.func @transform_2(%arg0: i32) -> (i32, i32) {
    %c0_i32 = arith.constant 0 : i32
    %c0_i32_0 = arith.constant 0 : i32
    %c0_i32_1 = arith.constant 0 : i32
    return %c0_i32, %c0_i32_0 : i32, i32
  }
  func.func @transform_3(%arg0: i32) -> (i32, i32) {
    %c0_i32 = arith.constant 0 : i32
    %c0_i32_0 = arith.constant 0 : i32
    %c0_i32_1 = arith.constant 0 : i32
    return %c0_i32, %c0_i32_0 : i32, i32
  }
  func.func @transform_4(%arg0: i32) -> (i32, i32) {
    %c0_i32 = arith.constant 0 : i32
    %c0_i32_0 = arith.constant 0 : i32
    %c0_i32_1 = arith.constant 0 : i32
    return %c0_i32, %c0_i32_0 : i32, i32
  }
  func.func @transform_5(%arg0: i32) -> (i32, i32) {
    %c0_i32 = arith.constant 0 : i32
    %c0_i32_0 = arith.constant 0 : i32
    %c0_i32_1 = arith.constant 0 : i32
    return %c0_i32, %c0_i32_0 : i32, i32
  }
  func.func @transform_6(%arg0: i32) -> (i32, i32) {
    %c0_i32 = arith.constant 0 : i32
    %c0_i32_0 = arith.constant 0 : i32
    %c0_i32_1 = arith.constant 0 : i32
    return %c0_i32, %c0_i32_0 : i32, i32
  }
  func.func @transform_7(%arg0: i32) -> (i32, i32) {
    %c0_i32 = arith.constant 0 : i32
    %c0_i32_0 = arith.constant 0 : i32
    %c0_i32_1 = arith.constant 0 : i32
    return %c0_i32, %c0_i32_0 : i32, i32
  }
  func.func @transform_8(%arg0: i32) -> (i32, i32) {
    %c0_i32 = arith.constant 0 : i32
    %c0_i32_0 = arith.constant 0 : i32
    return %arg0, %c0_i32 : i32, i32
  }
}

module attributes {stable_mosaic.version = 11 : i64} {
  func.func @_adapter_kernel(%arg0: i32, %arg1: memref<64x128xf32, #tpu.memory_space<vmem>>, %arg2: memref<64x128xf32, #tpu.memory_space<vmem>>, %arg3: memref<1x128xf32, #tpu.memory_space<vmem>>, %arg4: memref<1x128xf32, #tpu.memory_space<vmem>>, %arg5: memref<128x32xf32, #tpu.memory_space<vmem>>, %arg6: memref<1x32xf32, #tpu.memory_space<vmem>>, %arg7: memref<32x128xf32, #tpu.memory_space<vmem>>, %arg8: memref<1x128xf32, #tpu.memory_space<vmem>>, %arg9: memref<64x128xf32, #tpu.memory_space<vmem>>) attributes {dimension_semantics = [#tpu.dimension_semantics<parallel>], iteration_bounds = array<i64: 2>, scalar_prefetch = 0 : i64, scratch_operands = 0 : i64, tpu.core_type = #tpu.core_type<tc>, window_params = [{transform_indices = @transform_0, window_bounds = array<i64: 64, 128>}, {transform_indices = @transform_1, window_bounds = array<i64: 64, 128>}, {pipeline_mode = #tpu.pipeline_mode<synchronous>, transform_indices = @transform_2, window_bounds = array<i64: 1, 128>}, {pipeline_mode = #tpu.pipeline_mode<synchronous>, transform_indices = @transform_3, window_bounds = array<i64: 1, 128>}, {pipeline_mode = #tpu.pipeline_mode<synchronous>, transform_indices = @transform_4, window_bounds = array<i64: 128, 32>}, {pipeline_mode = #tpu.pipeline_mode<synchronous>, transform_indices = @transform_5, window_bounds = array<i64: 1, 32>}, {pipeline_mode = #tpu.pipeline_mode<synchronous>, transform_indices = @transform_6, window_bounds = array<i64: 32, 128>}, {pipeline_mode = #tpu.pipeline_mode<synchronous>, transform_indices = @transform_7, window_bounds = array<i64: 1, 128>}, {transform_indices = @transform_8, window_bounds = array<i64: 64, 128>}]} {
    %c0 = arith.constant 0 : index
    %c0_0 = arith.constant 0 : index
    %0 = vector.load %arg1[%c0, %c0_0] : memref<64x128xf32, #tpu.memory_space<vmem>>, vector<64x128xf32>
    %cst = arith.constant dense<0.000000e+00> : vector<64xf32>
    %1 = vector.multi_reduction <add>, %0, %cst [1] : vector<64x128xf32> to vector<64xf32>
    %2 = vector.shape_cast %1 : vector<64xf32> to vector<64x1xf32>
    %cst_1 = arith.constant 7.812500e-03 : f32
    %3 = vector.broadcast %cst_1 : f32 to vector<64x1xf32>
    %4 = arith.mulf %2, %3 : vector<64x1xf32>
    %5 = arith.mulf %0, %0 : vector<64x128xf32>
    %cst_2 = arith.constant dense<0.000000e+00> : vector<64xf32>
    %6 = vector.multi_reduction <add>, %5, %cst_2 [1] : vector<64x128xf32> to vector<64xf32>
    %7 = vector.shape_cast %6 : vector<64xf32> to vector<64x1xf32>
    %cst_3 = arith.constant 7.812500e-03 : f32
    %8 = vector.broadcast %cst_3 : f32 to vector<64x1xf32>
    %9 = arith.mulf %7, %8 : vector<64x1xf32>
    %10 = arith.mulf %4, %4 : vector<64x1xf32>
    %11 = arith.subf %9, %10 : vector<64x1xf32>
    %cst_4 = arith.constant 0.000000e+00 : f32
    %12 = vector.broadcast %cst_4 : f32 to vector<64x1xf32>
    %13 = arith.maximumf %11, %12 : vector<64x1xf32>
    %14 = vector.broadcast %4 : vector<64x1xf32> to vector<64x128xf32>
    %15 = arith.subf %0, %14 : vector<64x128xf32>
    %cst_5 = arith.constant 9.99999974E-6 : f32
    %16 = vector.broadcast %cst_5 : f32 to vector<64x1xf32>
    %17 = arith.addf %13, %16 : vector<64x1xf32>
    %18 = math.rsqrt %17 : vector<64x1xf32>
    %19 = vector.broadcast %18 : vector<64x1xf32> to vector<64x128xf32>
    %20 = arith.mulf %15, %19 : vector<64x128xf32>
    %c0_6 = arith.constant 0 : index
    %c0_7 = arith.constant 0 : index
    %21 = vector.load %arg3[%c0_6, %c0_7] : memref<1x128xf32, #tpu.memory_space<vmem>>, vector<1x128xf32>
    %22 = vector.broadcast %21 : vector<1x128xf32> to vector<64x128xf32>
    %23 = arith.mulf %20, %22 : vector<64x128xf32>
    %c0_8 = arith.constant 0 : index
    %c0_9 = arith.constant 0 : index
    %24 = vector.load %arg4[%c0_8, %c0_9] : memref<1x128xf32, #tpu.memory_space<vmem>>, vector<1x128xf32>
    %25 = vector.broadcast %24 : vector<1x128xf32> to vector<64x128xf32>
    %26 = arith.addf %23, %25 : vector<64x128xf32>
    %c0_10 = arith.constant 0 : index
    %c0_11 = arith.constant 0 : index
    %27 = vector.load %arg5[%c0_10, %c0_11] : memref<128x32xf32, #tpu.memory_space<vmem>>, vector<128x32xf32>
    %cst_12 = arith.constant dense<0.000000e+00> : vector<64x32xf32>
    %28 = tpu.matmul %26, %27, %cst_12 {dimension_numbers = #tpu.dot_dimension_numbers<[1], [0], [0], [1], [0, 0, 1, 1], [], []>, precision = #tpu.contract_precision<fp32>} : vector<64x128xf32>, vector<128x32xf32>, vector<64x32xf32> -> vector<64x32xf32>
    %c0_13 = arith.constant 0 : index
    %c0_14 = arith.constant 0 : index
    %29 = vector.load %arg6[%c0_13, %c0_14] : memref<1x32xf32, #tpu.memory_space<vmem>>, vector<1x32xf32>
    %30 = vector.broadcast %29 : vector<1x32xf32> to vector<64x32xf32>
    %31 = arith.addf %28, %30 : vector<64x32xf32>
    %cst_15 = arith.constant 0.000000e+00 : f32
    %32 = vector.broadcast %cst_15 : f32 to vector<64x32xf32>
    %33 = arith.maximumf %31, %32 : vector<64x32xf32>
    %c0_16 = arith.constant 0 : index
    %c0_17 = arith.constant 0 : index
    %34 = vector.load %arg7[%c0_16, %c0_17] : memref<32x128xf32, #tpu.memory_space<vmem>>, vector<32x128xf32>
    %cst_18 = arith.constant dense<0.000000e+00> : vector<64x128xf32>
    %35 = tpu.matmul %33, %34, %cst_18 {dimension_numbers = #tpu.dot_dimension_numbers<[1], [0], [0], [1], [0, 0, 1, 1], [], []>, precision = #tpu.contract_precision<fp32>} : vector<64x32xf32>, vector<32x128xf32>, vector<64x128xf32> -> vector<64x128xf32>
    %c0_19 = arith.constant 0 : index
    %c0_20 = arith.constant 0 : index
    %36 = vector.load %arg8[%c0_19, %c0_20] : memref<1x128xf32, #tpu.memory_space<vmem>>, vector<1x128xf32>
    %37 = vector.broadcast %36 : vector<1x128xf32> to vector<64x128xf32>
    %38 = arith.addf %35, %37 : vector<64x128xf32>
    %cst_21 = arith.constant 5.000000e-01 : f32
    %39 = vector.broadcast %cst_21 : f32 to vector<64x128xf32>
    %40 = arith.mulf %38, %39 : vector<64x128xf32>
    %c0_22 = arith.constant 0 : index
    %c0_23 = arith.constant 0 : index
    %41 = vector.load %arg2[%c0_22, %c0_23] : memref<64x128xf32, #tpu.memory_space<vmem>>, vector<64x128xf32>
    %42 = arith.addf %40, %41 : vector<64x128xf32>
    %c0_24 = arith.constant 0 : index
    %c0_25 = arith.constant 0 : index
    %43 = vector.load %arg9[%c0_24, %c0_25] : memref<64x128xf32, #tpu.memory_space<vmem>>, vector<64x128xf32>
    tpu.vector_store %arg9[%c0_24, %c0_25], %42 {strides = array<i32>} : memref<64x128xf32, #tpu.memory_space<vmem>>, vector<64x128xf32>,
    return
  }
  func.func @transform_0(%arg0: i32) -> (i32, i32) {
    %c0_i32 = arith.constant 0 : i32
    %c0_i32_0 = arith.constant 0 : i32
    return %arg0, %c0_i32 : i32, i32
  }
  func.func @transform_1(%arg0: i32) -> (i32, i32) {
    %c0_i32 = arith.constant 0 : i32
    %c0_i32_0 = arith.constant 0 : i32
    return %arg0, %c0_i32 : i32, i32
  }
  func.func @transform_2(%arg0: i32) -> (i32, i32) {
    %c0_i32 = arith.constant 0 : i32
    %c0_i32_0 = arith.constant 0 : i32
    %c0_i32_1 = arith.constant 0 : i32
    return %c0_i32, %c0_i32_0 : i32, i32
  }
  func.func @transform_3(%arg0: i32) -> (i32, i32) {
    %c0_i32 = arith.constant 0 : i32
    %c0_i32_0 = arith.constant 0 : i32
    %c0_i32_1 = arith.constant 0 : i32
    return %c0_i32, %c0_i32_0 : i32, i32
  }
  func.func @transform_4(%arg0: i32) -> (i32, i32) {
    %c0_i32 = arith.constant 0 : i32
    %c0_i32_0 = arith.constant 0 : i32
    %c0_i32_1 = arith.constant 0 : i32
    return %c0_i32, %c0_i32_0 : i32, i32
  }
  func.func @transform_5(%arg0: i32) -> (i32, i32) {
    %c0_i32 = arith.constant 0 : i32
    %c0_i32_0 = arith.constant 0 : i32
    %c0_i32_1 = arith.constant 0 : i32
    return %c0_i32, %c0_i32_0 : i32, i32
  }
  func.func @transform_6(%arg0: i32) -> (i32, i32) {
    %c0_i32 = arith.constant 0 : i32
    %c0_i32_0 = arith.constant 0 : i32
    %c0_i32_1 = arith.constant 0 : i32
    return %c0_i32, %c0_i32_0 : i32, i32
  }
  func.func @transform_7(%arg0: i32) -> (i32, i32) {
    %c0_i32 = arith.constant 0 : i32
    %c0_i32_0 = arith.constant 0 : i32
    %c0_i32_1 = arith.constant 0 : i32
    return %c0_i32, %c0_i32_0 : i32, i32
  }
  func.func @transform_8(%arg0: i32) -> (i32, i32) {
    %c0_i32 = arith.constant 0 : i32
    %c0_i32_0 = arith.constant 0 : i32
    return %arg0, %c0_i32 : i32, i32
  }
}

</mosaic_0001>

<bundles_post_ra>
// kernel: tpu_custom_call.1
= control target key start
LH: loop header
LB: loop body
LE: loop exit
PB: predicated region body
PF: predicated region fallthrough
CT: control target
= control target key end

     0   :  { %13 = vsyncpa [#allocation3], 0  ;;  %s4581_s0 = inlined_call_operand.vmem [shape: f32[128,128], index: 0, kind: input, shape index: {}]   ;;  %s4582_s1 = inlined_call_operand.hbm [shape: f32[128,128], index: 1, kind: input, shape index: {}]   ;;  %s4583_s2 = inlined_call_operand.vmem [shape: f32[1,128], index: 2, kind: input, shape index: {}]   ;;  %s4584_s3 = inlined_call_operand.vmem [shape: f32[1,128], index: 3, kind: input, shape index: {}]   ;;  %s4585_s4 = inlined_call_operand.vmem [shape: f32[128,32], index: 4, kind: input, shape index: {}]   ;;  %s4586_s5 = inlined_call_operand.vmem [shape: f32[1,32], index: 5, kind: input, shape index: {}]   ;;  %s4587_s6 = inlined_call_operand.vmem [shape: f32[32,128], index: 6, kind: input, shape index: {}]   ;;  %s4588_s7 = inlined_call_operand.vmem [shape: f32[1,128], index: 7, kind: input, shape index: {}]   ;;  %s4589_s8 = inlined_call_operand.hbm [shape: f32[128,128], index: 8, kind: output, shape index: {}]  }
   0x1   :  { %15 = vsyncpa [#allocation3 + $0x1], 0 }
   0x2   :  { %16 = vsyncpa [#allocation4], 0 }
   0x3   :  { %18 = vsyncpa [#allocation4 + $0x1], 0  ;;  %s3613_s27 = smov 0   ;;  %s3615_s28 = smov 0  }
   0x4   :  { %s3617_s29 = smov 0   ;;  %s3619_s30 = smov 0  }
   0x5 LB: > { %s3634_s9 = sadd.s32 4294967295, %s3560_s30   ;;  %s2424_s10 = sadd.s32 4294967294, %s3560_s30   ;;  %s3560_s30 = sphi %s3619_s30, %s4637_s30   ;;  %s3556_s29 = sphi %s3617_s29, %s4636_s29   ;;  %s3552_s28 = sphi %s3615_s28, %s4635_s28   ;;  %s3548_s27 = sphi %s3613_s27, %s4634_s27  }
   0x6   : > { %s3638_s11 = sadd.s32 1, %s3560_s30   ;;  %s57_s12 = sadd.s32 1, %s3556_s29 }
   0x7   : > { %s54_s13 = ssub.s32 %s3560_s30, %s3638_s11  ;;  %p64_p0 = scmp.ne.s32.totalorder %s3556_s29, %s3552_s28 }
   0x8   : > { %p55_p1 = scmp.eq.s32.totalorder %s54_s13, 0  ;;  %p65_p2 = scmp.eq.s32.totalorder %s3560_s30, 0 }
   0x9   : > { %p70_p3 = scmp.ne.s32.totalorder %s3552_s28, %s3548_s27  ;;  %p71_p4 = scmp.eq.s32.totalorder %s3634_s9, 0 }
   0xa   : > { %s3650_s14 = scalar_select %p55_p1, %s3556_s29, %s57_s12  }
   0xb   : > { %p3652_p5 = por %p65_p2, %p64_p0  ;;  %p3656_p6 = por %p71_p4, %p70_p3 }
   0xc   : > { %p220_p7 = scmp.eq.s32.totalorder %s3634_s9, 1  ;;  %p226_p8 = scmp.eq.s32.totalorder %s2424_s10, 1 }
   0xd   : > { %p3410_p10 = scmp.lt.s32.totalorder %s3560_s30, 2  ;;  %s273_s19 = sand.u32 1, %s3556_s29  }
   0xe   : > { %p3663_p11 = por %p220_p7, %p64_p0  ;;  %p3667_p12 = por %p226_p8, %p70_p3 }
   0xf   : > { %s2444_s20 = sshll.u32 %s3560_s30, 10  ;;  %s2427_s21 = sshll.u32 %s273_s19, 6 }
  0x10   : > { %s4610_s17 = scalar_select %p3663_p11, 1, 0 }
  0x11   : > { %s4611_s18 = scalar_select %p3667_p12, 1, 0 }
  0x12   : > { %s3676_s24 = scalar_lea.hbm %s4582_s1, %s2444_s20  ;;  %s277_s25 = scalar_lea.vmem [#allocation2], %s2427_s21 }
  0x13   : > { %s284_s26 = sshll.u32 %s277_s25, 4  ;;  %p3680_p13 = pnand %p3410_p10, %p3652_p5  ;;  %s3684_s26 = int_to_ptr.vmem [resolvable:$true] %s284_s26 }
  0x14   : > { %s3686_s12 = scalar_lea.sflag [#allocation3], %s273_s19  ;;  %s3464_s13 = scalar_lea.hbm %s3676_s24, 1024 }
  0x15   : > { %p3465_p0 = scmp.ne.s32.totalorder %s3676_s24, %s3464_s13  ;;  %p3466_p1 = pneg %p3680_p13 }
  0x16   : > { %s3469_s21 = scalar_lea.hbm %s4582_s1, 2048  ;;  %p3470_p4 = scmp.lt.u32.totalorder %s3676_s24, %s4582_s1 }
  0x17   : > { %p3467_p2 = pnand %p3466_p1, %p3465_p0  ;;  %p3471_p5 = scmp.lt.u32.totalorder %s3469_s21, %s3464_s13 }
  0x18   : > { %p3473_p8 = scmp.lt.u32.totalorder %s3464_s13, %s3676_s24 }
  0x19   : > { %p3468_p3 = pneg %p3467_p2  ;;  %p3472_p7 = por %p3471_p5, %p3470_p4 }
  0x1b   : > { %p3474_p10 = por %p3473_p8, %p3472_p7 }
  0x1d   : > { %p3475_p9 = pnand %p3474_p10, %p3468_p3 }
  0x1f   : > { %3478 = shalt.err (!%p3475_p9)
}
  0x20   : > { %s3479_s19 = scalar_lea.vmem %s3684_s26, 1024  ;;  %s3562_s25 = smov [#allocation2]  }
  0x21   : > { %p3480_p0 = scmp.ne.s32.totalorder %s3684_s26, %s3479_s19  ;;  %s3484_s20 = sshll.u32 %s3562_s25, 4  ;;  %s3485_s20 = int_to_ptr.vmem [resolvable:$false] %s3484_s20 }
  0x22   : > { %s3486_s15 = scalar_lea.vmem %s3485_s20, 2048  ;;  %p3487_p11 = scmp.lt.s32.totalorder %s3684_s26, %s3485_s20 }
  0x23   : > { %p3482_p2 = pnand %p3480_p0, %p3466_p1  ;;  %p3488_p4 = scmp.lt.s32.totalorder %s3486_s15, %s3479_s19 }
  0x25   : > { %p3483_p12 = pneg %p3482_p2  ;;  %p3489_p5 = por %p3488_p4, %p3487_p11 }
  0x27   : > { %p3490_p7 = pnand %p3489_p5, %p3483_p12 }
  0x29   : > { %3493 = shalt.err (!%p3490_p7)
}
  0x2a   : > { %s3563_s13 = smov 128   ;;  %s3564_s21 = smov 8  }
  0x2b   : > { %3405 = dma.hbm_to_vmem [thread:$0]  (!%p3680_p13), %s3676_s24, 1024, %s3684_s26, %s3686_s12, %s3563_s13, %s3563_s13, %s3564_s21  }
  0x2c   : > { %p2430_p9 = scmp.ge.s32.totalorder %s3560_s30, 1  ;;  %p292_p1 = scmp.lt.s32.totalorder %s3560_s30, 3 }
  0x2e   : > { %p293_p3 = pnand %p2430_p9, %p292_p1 }
  0x30   : > { %296 = sbr.rel (%p293_p3) target bundleno = 925 (0x39d), region = 52 }
  0x37   : > { %s3717_s22 = sand.u32 1, %s3552_s28  }
  0x38   : > { %s2431_s23 = sshll.u32 %s3717_s22, 6  ;;  %s299_s19 = scalar_lea.sflag [#allocation3], %s3717_s22 }
  0x39   : > { %s3723_s25 = scalar_lea.vmem [#allocation2], %s2431_s23 }
  0x3a   : > { %3539 = dma.done.wait (%p3656_p6), %s299_s19, 1024  }
  0x3b   : > { %3541 = vsyncadd (%p3656_p6), %s299_s19, 4294966272  ;;  %s2433_s24 = sshll.u32 %s3634_s9, 3  ;;  %v498_v3 = vld [vmem:[%s4585_s4] sm:$0xff]  ;;  %v499_v5 = vld [vmem:[%s4585_s4 + $0x8] sm:$0xff]  ;;  %vm1482_vm0 = vcmask 261120   ;;  %s4515_s16 = scalar_lea.vmem [#allocation5], %s2431_s23 }
  0x3c   : > { %p341_p11 = scmp.lt.s32.totalorder %s2433_s24, 15  ;;  %v522_v6 = vand.u32 4294901760, %v498_v3  ;;  %v525_v7 = vand.u32 4294901760, %v499_v5  ;;  %v3763_v11 = vld [vmem:[%s4585_s4 + $0x10] sm:$0xff]  ;;  %v3768_v12 = vld [vmem:[%s4585_s4 + $0x18] sm:$0xff]  ;;  %v3801_v24 = vld [vmem:[%s4585_s4 + $0x20] sm:$0xff] }
  0x3d   : > { %v528_v14 = vand.u32 4294901760, %v3763_v11  ;;  %v531_v15 = vand.u32 4294901760, %v3768_v12  ;;  %v3806_v25 = vld [vmem:[%s4585_s4 + $0x28] sm:$0xff]  ;;  %v534_v29 = vand.u32 4294901760, %v3801_v24  ;;  %v3835_v38 = vld [vmem:[%s4585_s4 + $0x30] sm:$0xff]  ;;  %v3840_v39 = vld [vmem:[%s4585_s4 + $0x38] sm:$0xff] }
  0x3e   : > { %s4639_s24 = smov (!%p341_p11, %s2433_s24), 15  ;;  %v3753_v8 = vsub.f32 %v498_v3, %v522_v6  ;;  %v3758_v10 = vsub.f32 %v499_v5, %v525_v7  ;;  %v537_v31 = vand.u32 4294901760, %v3806_v25  ;;  %v540_v43 = vand.u32 4294901760, %v3835_v38  ;;  %v3873_v54 = vld [vmem:[%s4585_s4 + $0x40] sm:$0xff]  ;;  %v3878_v55 = vld [vmem:[%s4585_s4 + $0x48] sm:$0xff]  ;;  %s2339_s23 = sshll.u32 %s4515_s16, 4  ;;  %s4529_s23 = int_to_ptr.vmem [resolvable:$true] %s2339_s23 }
  0x3f   : > { %s2434_s26 = sshll.u32 %s4639_s24, 3  ;;  %v3786_v20 = vsub.f32 %v3763_v11, %v528_v14  ;;  %v3791_v21 = vsub.f32 %v3768_v12, %v531_v15  ;;  %v3822_v34 = vsub.f32 %v3801_v24, %v534_v29  ;;  %v543_v47 = vand.u32 4294901760, %v3840_v39  ;;  %v512_v24 = vld [vmem:[%s4585_s4 + $0x70] sm:$0xff]  ;;  %s2445_s15 = sshll.u32 %s3634_s9, 10 }
  0x40   : > { %s3733_s20 = scalar_lea.vmem %s4581_s0, %s2434_s26  ;;  %v4606_v13 = vand.u32 4294901760, %v3753_v8  ;;  %v4605_v17 = vand.u32 4294901760, %v3758_v10  ;;  %v3830_v37 = vsub.f32 %v3806_v25, %v537_v31  ;;  %v3852_v48 = vpack.c.bf16 %v525_v7, %v522_v6  ;;  %v3911_v7 = vld [vmem:[%s4585_s4 + $0x50] sm:$0xff]  ;;  %v513_v25 = vld [vmem:[%s4585_s4 + $0x78] sm:$0xff]  ;;  %s4535_s19 = scalar_lea.hbm %s4589_s8, %s2445_s15 }
  0x41   : > { %v3736_v0 = vld [vmem:[%s3733_s20] sm:$0xff]  ;;  %v3739_v1 = vld [vmem:[%s3733_s20 + $0x8] sm:$0xff]  ;;  %v3756_v9 = vld [vmem:[%s3733_s20 + $0x10] sm:$0xff]  ;;  %v4604_v27 = vand.u32 4294901760, %v3786_v20  ;;  %v4603_v28 = vand.u32 4294901760, %v3791_v21  ;;  %v4602_v42 = vand.u32 4294901760, %v3822_v34  ;;  %v3863_v52 = vsub.f32 %v3835_v38, %v540_v43 }
  0x42   : > { %356 = vadd.xlane.f32.xlu0 %v3736_v0  ;;  %v380_v2 = vmul.f32 %v3736_v0, %v3736_v0  ;;  %v381_v4 = vmul.f32 %v3739_v1, %v3739_v1  ;;  %v3774_v16 = vld [vmem:[%s3733_s20 + $0x18] sm:$0xff]  ;;  %v382_v18 = vmul.f32 %v3756_v9, %v3756_v9  ;;  %v686_v19 = vsub.f32 %v3753_v8, %v4606_v13  ;;  %v3825_v35 = vld [vmem:[%s3733_s20 + $0x20] sm:$0xff]  ;;  %v3845_v44 = vld [vmem:[%s3733_s20 + $0x28] sm:$0xff]  ;;  %s2326_s9 = scalar_lea.sflag [#allocation4], %s3717_s22  ;;  %s3494_s24 = scalar_lea.vmem %s4529_s23, 1024 }
  0x43   : > { %v383_v22 = vmul.f32 %v3774_v16, %v3774_v16  ;;  %v693_v23 = vsub.f32 %v3758_v10, %v4605_v17  ;;  %v700_v32 = vsub.f32 %v3786_v20, %v4604_v27  ;;  %v707_v33 = vsub.f32 %v3791_v21, %v4603_v28  ;;  %3047 = vmatprep.subr.bf16.mxu1 %v3852_v48  ;;  %v3899_v3 = vld [vmem:[%s3733_s20 + $0x30] sm:$0xff]  ;;  %p3495_p6 = scmp.ne.s32.totalorder %s4529_s23, %s3494_s24  ;;  %p4631_p12 = scmp.ne.s32.totalorder %s4610_s17, 0 }
  0x44   : > { %388 = vadd.xlane.f32.xlu1 %v380_v2  ;;  %v687_v26 = vand.u32 4294901760, %v686_v19  ;;  %v384_v45 = vmul.f32 %v3825_v35, %v3825_v35  ;;  %v4601_v46 = vand.u32 4294901760, %v3830_v37  ;;  %v714_v50 = vsub.f32 %v3822_v34, %v4602_v42  ;;  %3049 = vmatpush3.bf16.msra.mxu1 %v3852_v48 }
  0x45   : > { %v694_v30 = vand.u32 4294901760, %v693_v23  ;;  %v701_v40 = vand.u32 4294901760, %v700_v32  ;;  %v708_v41 = vand.u32 4294901760, %v707_v33  ;;  %v3868_v53 = vsub.f32 %v3840_v39, %v543_v47  ;;  %p3496_p13 = pnand %p3495_p6, %p4631_p12 }
  0x46   : > { %358 = vadd.xlane.f32.xlu0 %v3739_v1  ;;  %v721_v51 = vsub.f32 %v3830_v37, %v4601_v46  ;;  %v385_v56 = vmul.f32 %v3845_v44, %v3845_v44  ;;  %v715_v57 = vand.u32 4294901760, %v714_v50  ;;  %v546_v58 = vand.u32 4294901760, %v3873_v54 }
  0x47   : > { %v3078_v36 = vpack.c.bf16 %v694_v30, %v687_v26  ;;  %v3082_v49 = vpack.c.bf16 %v708_v41, %v701_v40  ;;  %v549_v59 = vand.u32 4294901760, %v3878_v55  ;;  %v4600_v61 = vand.u32 4294901760, %v3863_v52  ;;  %v3923_v30 = vld [vmem:[%s3733_s20 + $0x38] sm:$0xff]  ;;  %p3497_p8 = pneg %p3496_p13 }
  0x48   : > { %390 = vadd.xlane.f32.xlu1 %v381_v4  ;;  %v722_v60 = vand.u32 4294901760, %v721_v51  ;;  %v4599_v62 = vand.u32 4294901760, %v3868_v53  ;;  %v3891_v63 = vsub.f32 %v3873_v54, %v546_v58  ;;  %v552_v23 = vand.u32 4294901760, %v3911_v7 }
  0x49   : > { %3079 = vmatprep.subr.bf16.mxu0 %v3078_v36  ;;  %v3896_v2 = vsub.f32 %v3878_v55, %v549_v59  ;;  %v728_v5 = vsub.f32 %v3863_v52, %v4600_v61  ;;  %v386_v32 = vmul.f32 %v3899_v3, %v3899_v3  ;;  %v3932_v40 = vpack.c.bf16 %v531_v15, %v528_v14  ;;  %v3955_v14 = vld [vmem:[%s4585_s4 + $0x60] sm:$0xff]  ;;  %v511_v15 = vld [vmem:[%s4585_s4 + $0x68] sm:$0xff] }
  0x4a   : > { %360 = vadd.xlane.f32.xlu0 %v3756_v9  ;;  %3081 = vmatpush3.bf16.msra.mxu0 %v3078_v36  ;;  %v3086_v4 = vpack.c.bf16 %v722_v60, %v715_v57  ;;  %v735_v6 = vsub.f32 %v3868_v53, %v4599_v62  ;;  %v4598_v19 = vand.u32 4294901760, %v3891_v63  ;;  %v3945_v11 = vsub.f32 %v3911_v7, %v552_v23 }
  0x4b   : > { %3083 = vmatprep.subr.bf16.mxu0 %v3082_v49  ;;  %v729_v33 = vand.u32 4294901760, %v728_v5  ;;  %3051 = vmatprep.subr.bf16.mxu1 %v3932_v40  ;;  %v558_v57 = vand.u32 4294901760, %v3955_v14  ;;  %v561_v60 = vand.u32 4294901760, %v511_v15 }
  0x4c   : > { %362 = vadd.xlane.f32.xlu1 %v3774_v16  ;;  %v736_v36 = vand.u32 4294901760, %v735_v6  ;;  %v742_v41 = vsub.f32 %v3891_v63, %v4598_v19  ;;  %3053 = vmatpush3.bf16.msra.mxu1 %v3932_v40  ;;  %v3970_v6 = vpack.c.bf16 %v537_v31, %v534_v29  ;;  %v564_v31 = vand.u32 4294901760, %v512_v24 }
  0x4e   : > { %392 = vadd.xlane.f32.xlu0 %v382_v18  ;;  %3085 = vmatpush3.bf16.msra.mxu0 %v3082_v49  ;;  %v3916_v18 = vld [vmem:[%s4585_s4 + $0x58] sm:$0xff]  ;;  %v387_v49 = vmul.f32 %v3923_v30, %v3923_v30  ;;  %v3090_v50 = vpack.c.bf16 %v736_v36, %v729_v33  ;;  %v743_v51 = vand.u32 4294901760, %v742_v41  ;;  %v3973_v36 = vsub.f32 %v3955_v14, %v558_v57 }
  0x4f   : > { %v555_v26 = vand.u32 4294901760, %v3916_v18  ;;  %3087 = vmatprep.subr.bf16.mxu0 %v3086_v4  ;;  %3055 = vmatprep.subr.bf16.mxu1 %v3970_v6 }
  0x50   : > { %394 = vadd.xlane.f32.xlu1 %v383_v22  ;;  %v4593_v22 = vand.u32 4294901760, %v3896_v2  ;;  %v4597_v29 = vand.u32 4294901760, %v3973_v36  ;;  %3057 = vmatpush3.bf16.msra.mxu1 %v3970_v6 }
  0x51   : > { %v3950_v12 = vsub.f32 %v3916_v18, %v555_v26  ;;  %v4031_v54 = vpack.c.bf16 %v555_v26, %v552_v23  ;;  %v4048_v18 = vpack.c.bf16 %v3791_v21, %v3786_v20  ;;  %v4059_v23 = vpack.c.bf16 %v3868_v53, %v3863_v52 }
  0x52   : > { %364 = vadd.xlane.f32.xlu0 %v3825_v35  ;;  %3089 = vmatpush3.bf16.msra.mxu0 %v3086_v4  ;;  %v4592_v4 = vand.u32 4294901760, %v3945_v11  ;;  %v4063_v26 = vpack.c.bf16 %v3896_v2, %v3891_v63 }
  0x53   : > { %3091 = vmatprep.subr.bf16.mxu0 %v3090_v50  ;;  %v4591_v5 = vand.u32 4294901760, %v3950_v12 }
  0x54   : > { %366 = vadd.xlane.f32.xlu1 %v3845_v44  ;;  %v756_v41 = vsub.f32 %v3945_v11, %v4592_v4 }
  0x56   : > { %396 = vadd.xlane.f32.xlu0 %v384_v45  ;;  %v749_v45 = vsub.f32 %v3896_v2, %v4593_v22  ;;  %3093 = vmatpush3.bf16.msra.mxu0 %v3090_v50  ;;  %v567_v50 = vand.u32 4294901760, %v513_v25  ;;  %v757_v14 = vand.u32 4294901760, %v756_v41 }
  0x58   : > { %398 = vadd.xlane.f32.xlu1 %v385_v56  ;;  %v750_v56 = vand.u32 4294901760, %v749_v45  ;;  %v763_v45 = vsub.f32 %v3950_v12, %v4591_v5  ;;  %v4002_v5 = vsub.f32 %v512_v24, %v564_v31  ;;  %v4004_v4 = vsub.f32 %v513_v25, %v567_v50 }
  0x59   : > { %v4044_v7 = vpack.c.bf16 %v567_v50, %v564_v31 }
  0x5a   : > { %368 = vadd.xlane.f32.xlu0 %v3899_v3  ;;  %v3094_v33 = vpack.c.bf16 %v750_v56, %v743_v51  ;;  %v3997_v56 = vpack.c.bf16 %v543_v47, %v540_v43  ;;  %4613 = vst [vmem:[#allocation8_spill] sm:$0xff] %v4004_v4  ;;  %v4595_v39 = vand.u32 4294901760, %v4002_v5  ;;  %v4594_v43 = vand.u32 4294901760, %v4004_v4 }
  0x5b   : > { %v4075_v31 = vpack.c.bf16 %v4004_v4, %v4002_v5 }
  0x5c   : > { %370 = vadd.xlane.f32.xlu1 %v3923_v30  ;;  %3095 = vmatprep.subr.bf16.mxu0 %v3094_v33  ;;  %v791_v24 = vsub.f32 %v4004_v4, %v4594_v43 }
  0x5d   : > { %3097 = vmatpush3.bf16.msra.mxu0 %v3094_v33  ;;  %3059 = vmatprep.subr.bf16.mxu1 %v3997_v56  ;;  %v4017_v33 = vpack.c.bf16 %v549_v59, %v546_v58  ;;  %v4035_v58 = vpack.c.bf16 %v561_v60, %v558_v57  ;;  %v4039_v59 = vpack.c.bf16 %v3758_v10, %v3753_v8 }
  0x5e   : > { %400 = vadd.xlane.f32.xlu0 %v386_v32  ;;  %v3981_v32 = vsub.f32 %v511_v15, %v561_v60  ;;  %v764_v15 = vand.u32 4294901760, %v763_v45  ;;  %3061 = vmatpush3.bf16.msra.mxu1 %v3997_v56  ;;  %v784_v45 = vsub.f32 %v4002_v5, %v4595_v39  ;;  %v4067_v57 = vpack.c.bf16 %v3950_v12, %v3945_v11 }
  0x5f   : > { %3063 = vmatprep.subr.bf16.mxu1 %v4017_v33 }
  0x60   : > { %402 = vadd.xlane.f32.xlu1 %v387_v49  ;;  %v4596_v51 = vand.u32 4294901760, %v3981_v32  ;;  %v770_v49 = vsub.f32 %v3973_v36, %v4597_v29  ;;  %v3098_v22 = vpack.c.bf16 %v764_v15, %v757_v14  ;;  %v785_v14 = vand.u32 4294901760, %v784_v45 }
  0x61   : > { %v792_v15 = vand.u32 4294901760, %v791_v24  ;;  %v4071_v60 = vpack.c.bf16 %v3981_v32, %v3973_v36 }
  0x62   : > { %v777_v41 = vsub.f32 %v3981_v32, %v4596_v51  ;;  %v771_v38 = vand.u32 4294901760, %v770_v49  ;;  %3099 = vmatprep.subr.bf16.mxu0 %v3098_v22  ;;  %3065 = vmatpush3.bf16.msra.mxu1 %v4017_v33 }
  0x63   : > { %3101 = vmatpush3.bf16.msra.mxu0 %v3098_v22  ;;  %v3106_v55 = vpack.c.bf16 %v792_v15, %v785_v14  ;;  %3067 = vmatprep.subr.bf16.mxu1 %v4031_v54  ;;  %v4055_v22 = vpack.c.bf16 %v3830_v37, %v3822_v34 }
  0x64   : > { %v778_v47 = vand.u32 4294901760, %v777_v41 }
  0x66   : > { %v3102_v25 = vpack.c.bf16 %v778_v47, %v771_v38  ;;  %3069 = vmatpush3.bf16.msra.mxu1 %v4031_v54 }
  0x67   : > { %3071 = vmatprep.subr.bf16.mxu1 %v4035_v58 }
  0x68   : > { %3103 = vmatprep.subr.bf16.mxu0 %v3102_v25 }
  0x69   : > { %3105 = vmatpush3.bf16.msra.mxu0 %v3102_v25 }
  0x6a   : > { %3107 = vmatprep.subr.bf16.mxu0 %v3106_v55  ;;  %3073 = vmatpush3.bf16.msra.mxu1 %v4035_v58 }
  0x6b   : > { %3075 = vmatprep.subr.bf16.mxu1 %v4044_v7 }
  0x6d   : > { %3109 = vmatpush3.bf16.msra.mxu0 %v3106_v55 }
  0x6e   : > { %3111 = vmatprep.subr.bf16.mxu0 %v4039_v59  ;;  %3077 = vmatpush3.bf16.msra.mxu1 %v4044_v7 }
  0x6f   : > { %3286 = vmatprep.subr.bf16.mxu1 %v3852_v48 }
  0xcf   : > { %v357_v50 = vpop.xlane.xlu0 %356 }
  0xd0   : > { %v372_v49 = vmul.f32 0.0078125, %v357_v50 }
  0xd1   : > { %v389_v41 = vpop.xlane.xlu1 %388 }
  0xd2   : > { %v412_v38 = vmul.f32 %v372_v49, %v372_v49  ;;  %v404_v47 = vmul.f32 0.0078125, %v389_v41 }
  0xd3   : > { %v359_v45 = vpop.xlane.xlu0 %358 }
  0xd4   : > { %v420_v24 = vsub.f32 %v404_v47, %v412_v38  ;;  %v373_v25 = vmul.f32 0.0078125, %v359_v45 }
  0xd5   : > { %v391_v14 = vpop.xlane.xlu1 %390 }
  0xd6   : > { %v428_v15 = vmax.f32 %v420_v24, 0.0  ;;  %v413_v55 = vmul.f32 %v373_v25, %v373_v25  ;;  %v405_v43 = vmul.f32 0.0078125, %v391_v14 }
  0xd7   : > { %v361_v39 = vpop.xlane.xlu0 %360 }
  0xd8   : > { %v444_v51 = vadd.f32 1e-05, %v428_v15  ;;  %v421_v29 = vsub.f32 %v405_v43, %v413_v55  ;;  %v4077_v19 = vmul.f32 0.0078125, %v361_v39 }
  0xd9   : > { %v363_v62 = vpop.xlane.xlu1 %362 }
  0xda   : > { %3448 = vrsqrt.f32 %v444_v51  ;;  %v429_v61 = vmax.f32 %v421_v29, 0.0  ;;  %v414_v50 = vmul.f32 %v4077_v19, %v4077_v19  ;;  %v4081_v46 = vmul.f32 0.0078125, %v363_v62 }
  0xdb   : > { %v393_v41 = vpop.xlane.xlu0 %392 }
  0xdc   : > { %v445_v38 = vadd.f32 1e-05, %v429_v61  ;;  %v406_v47 = vmul.f32 0.0078125, %v393_v41  ;;  %v415_v45 = vmul.f32 %v4081_v46, %v4081_v46  ;;  %v436_v61 = vsub.f32 %v3736_v0, %v372_v49  ;;  %v4102_v49 = vld [vmem:[%s4584_s3] ss:$0 sm:$0xff] }
  0xdd   : > { %v395_v24 = vpop.xlane.xlu1 %394 }
  0xde   : > { %3450 = vrsqrt.f32 %v445_v38  ;;  %v422_v14 = vsub.f32 %v406_v47, %v414_v50  ;;  %v407_v43 = vmul.f32 0.0078125, %v395_v24  ;;  %v4095_v47 = vld [vmem:[%s4583_s2] ss:$0 sm:$0xff] }
  0xdf   : > { %v365_v39 = vpop.xlane.xlu0 %364 }
  0xe0   : > { %v430_v15 = vmax.f32 %v422_v14, 0.0  ;;  %v423_v55 = vsub.f32 %v407_v43, %v415_v45  ;;  %v4085_v51 = vmul.f32 0.0078125, %v365_v39 }
  0xe1   : > { %v367_v29 = vpop.xlane.xlu1 %366 }
  0xe2   : > { %v446_v42 = vadd.f32 1e-05, %v430_v15  ;;  %v431_v28 = vmax.f32 %v423_v55, 0.0  ;;  %v416_v62 = vmul.f32 %v4085_v51, %v4085_v51  ;;  %v4090_v41 = vmul.f32 0.0078125, %v367_v29 }
  0xe3   : > { %v397_v27 = vpop.xlane.xlu0 %396 }
  0xe4   : > { %v3449_v17 = vpop.eup %3448  ;;  %3452 = vrsqrt.f32 %v446_v42  ;;  %v447_v50 = vadd.f32 1e-05, %v431_v28  ;;  %v408_v38 = vmul.f32 0.0078125, %v397_v27  ;;  %v417_v45 = vmul.f32 %v4090_v41, %v4090_v41 }
  0xe5   : > { %v399_v24 = vpop.xlane.xlu1 %398  ;;  %v460_v14 = vmul.f32 %v3449_v17, %v436_v61  ;;  %v437_v27 = vsub.f32 %v3739_v1, %v373_v25 }
  0xe6   : > { %3454 = vrsqrt.f32 %v447_v50  ;;  %v424_v43 = vsub.f32 %v408_v38, %v416_v62  ;;  %v409_v0 = vmul.f32 0.0078125, %v399_v24 }
  0xe7   : > { %v369_v28 = vpop.xlane.xlu0 %368  ;;  %v475_v42 = vmul.f32 %v4095_v47, %v460_v14 }
  0xe8   : > { %v3451_v39 = vpop.eup %3450  ;;  %v432_v15 = vmax.f32 %v424_v43, 0.0  ;;  %v425_v55 = vsub.f32 %v409_v0, %v417_v45  ;;  %v4106_v29 = vmul.f32 0.0078125, %v369_v28  ;;  %v438_v0 = vsub.f32 %v3756_v9, %v4077_v19 }
  0xe9   : > { %v371_v13 = vpop.xlane.xlu1 %370  ;;  %v490_v17 = vadd.f32 %v4102_v49, %v475_v42  ;;  %v461_v62 = vmul.f32 %v3451_v39, %v437_v27 }
  0xea   : > { %v448_v61 = vadd.f32 1e-05, %v432_v15  ;;  %v433_v50 = vmax.f32 %v425_v55, 0.0  ;;  %v418_v38 = vmul.f32 %v4106_v29, %v4106_v29  ;;  %v4111_v24 = vmul.f32 0.0078125, %v371_v13 }
  0xeb   : > { %v401_v1 = vpop.xlane.xlu0 %400  ;;  %v4113_v25 = vand.u32 4294901760, %v490_v17  ;;  %v476_v14 = vmul.f32 %v4095_v47, %v461_v62  ;;  %v439_v62 = vsub.f32 %v3774_v16, %v4081_v46 }
  0xec   : > { %3456 = vrsqrt.f32 %v448_v61  ;;  %v449_v45 = vadd.f32 1e-05, %v433_v50  ;;  %v410_v43 = vmul.f32 0.0078125, %v401_v1  ;;  %v419_v27 = vmul.f32 %v4111_v24, %v4111_v24 }
  0xed   : > { %2738 = vmatprep.mubr.f32.mxu0 %v4113_v25  ;;  %v403_v28 = vpop.xlane.xlu1 %402  ;;  %v491_v13 = vadd.f32 %v4102_v49, %v476_v14  ;;  %v4123_v42 = vsub.f32 %v490_v17, %v4113_v25 }
  0xee   : > { %v3453_v39 = vpop.eup %3452  ;;  %3458 = vrsqrt.f32 %v449_v45  ;;  %v426_v15 = vsub.f32 %v410_v43, %v418_v38  ;;  %v411_v55 = vmul.f32 0.0078125, %v403_v28 }
  0xef   : > { %v4127_v61 = vand.u32 4294901760, %v491_v13  ;;  %v604_v9 = vand.u32 4294901760, %v4123_v42  ;;  %v462_v19 = vmul.f32 %v3453_v39, %v438_v0 }
  0xf0   : > { %v3455_v50 = vpop.eup %3454  ;;  %v434_v1 = vmax.f32 %v426_v15, 0.0  ;;  %v427_v4 = vsub.f32 %v411_v55, %v419_v27 }
  0xf1   : > { %2739 = vmatmul.mubr.f32.vlgmr.msra.gmra.mrb[0].mxu0 %v4127_v61  ;;  %v605_v17 = vsub.f32 %v4123_v42, %v604_v9  ;;  %v477_v38 = vmul.f32 %v4095_v47, %v462_v19  ;;  %v4136_v14 = vsub.f32 %v491_v13, %v4127_v61  ;;  %v463_v16 = vmul.f32 %v3455_v50, %v439_v62 }
  0xf2   : > { %v450_v46 = vadd.f32 1e-05, %v434_v1  ;;  %v435_v45 = vmax.f32 %v427_v4, 0.0  ;;  %3113 = vmatpush3.bf16.msra.mxu0 %v4039_v59  ;;  %v440_v13 = vsub.f32 %v3825_v35, %v4085_v51  ;;  %v441_v62 = vsub.f32 %v3845_v44, %v4090_v41 }
  0xf3   : > { %3115 = vmatprep.subr.bf16.mxu0 %v4048_v18  ;;  %v606_v43 = vand.u32 4294901760, %v605_v17  ;;  %v492_v0 = vadd.f32 %v4102_v49, %v477_v38  ;;  %v614_v27 = vand.u32 4294901760, %v4136_v14  ;;  %v478_v28 = vmul.f32 %v4095_v47, %v463_v16 }
  0xf4   : > { %3460 = vrsqrt.f32 %v450_v46  ;;  %v451_v39 = vadd.f32 1e-05, %v435_v45 }
  0xf5   : > { %2694 = vmatprep.mubr.f32.mxu1 %v606_v43  ;;  %v4145_v15 = vand.u32 4294901760, %v492_v0  ;;  %v615_v4 = vsub.f32 %v4136_v14, %v614_v27  ;;  %v493_v59 = vadd.f32 %v4102_v49, %v478_v28  ;;  %v442_v43 = vsub.f32 %v3899_v3, %v4106_v29 }
  0xf6   : > { %v3457_v55 = vpop.eup %3456  ;;  %3462 = vrsqrt.f32 %v451_v39  ;;  %3117 = vmatpush3.bf16.msra.mxu0 %v4048_v18 }
  0xf7   : > { %2741 = vmatprep.mubr.f32.mxu0 %v4145_v15  ;;  %3119 = vmatprep.subr.bf16.mxu0 %v4055_v22  ;;  %v616_v35 = vand.u32 4294901760, %v615_v4  ;;  %v4156_v51 = vand.u32 4294901760, %v493_v59  ;;  %v4159_v19 = vsub.f32 %v492_v0, %v4145_v15  ;;  %v464_v50 = vmul.f32 %v3457_v55, %v440_v13 }
  0xf8   : > { %v3459_v1 = vpop.eup %3458  ;;  %v443_v4 = vsub.f32 %v3923_v30, %v4111_v24 }
  0xf9   : > { %2695 = vmatmul.mubr.f32.vlgmr.msra.gmra.mrb[0].mxu1 %v616_v35  ;;  %2742 = vmatmul.mubr.f32.gmra.mrb[2].mxu0 %v4156_v51  ;;  %v624_v44 = vand.u32 4294901760, %v4159_v19  ;;  %v479_v41 = vmul.f32 %v4095_v47, %v464_v50  ;;  %v4165_v18 = vsub.f32 %v493_v59, %v4156_v51  ;;  %v465_v17 = vmul.f32 %v3459_v1, %v441_v62 }
  0xfa   : > { %3121 = vmatpush3.bf16.msra.mxu0 %v4055_v22  ;;  %3294 = vmatpush3.bf16.msra.mxu1 %v3852_v48 }
  0xfb   : > { %3123 = vmatprep.subr.bf16.mxu0 %v4059_v23  ;;  %3287 = vmatprep.subr.bf16.mxu1 %v3932_v40  ;;  %v625_v38 = vsub.f32 %v4159_v19, %v624_v44  ;;  %v494_v16 = vadd.f32 %v4102_v49, %v479_v41  ;;  %v634_v46 = vand.u32 4294901760, %v4165_v18  ;;  %v480_v45 = vmul.f32 %v4095_v47, %v465_v17 }
  0xfd   : > { %v626_v22 = vand.u32 4294901760, %v625_v38  ;;  %v4179_v0 = vand.u32 4294901760, %v494_v16  ;;  %v635_v28 = vsub.f32 %v4165_v18, %v634_v46  ;;  %v495_v39 = vadd.f32 %v4102_v49, %v480_v45 }
  0xfe   : > { %v3461_v13 = vpop.eup %3460  ;;  %3125 = vmatpush3.bf16.msra.mxu0 %v4059_v23  ;;  %3295 = vmatpush3.bf16.msra.mxu1 %v3932_v40 }
  0xff   : > { %2697 = vmatprep.mubr.f32.mxu1 %v626_v22  ;;  %2744 = vmatprep.mubr.f32.mxu0 %v4179_v0  ;;  %v636_v3 = vand.u32 4294901760, %v635_v28  ;;  %v4190_v29 = vand.u32 4294901760, %v495_v39  ;;  %v4193_v59 = vsub.f32 %v494_v16, %v4179_v0  ;;  %v466_v55 = vmul.f32 %v3461_v13, %v442_v43 }
 0x100   : > { %v3463_v62 = vpop.eup %3462  ;;  %3127 = vmatprep.subr.bf16.mxu0 %v4063_v26  ;;  %3288 = vmatprep.subr.bf16.mxu1 %v3970_v6 }
 0x101   : > { %2698 = vmatmul.mubr.f32.gmra.mrb[2].mxu1 %v636_v3  ;;  %2745 = vmatmul.mubr.f32.gmra.mrb[4].mxu0 %v4190_v29  ;;  %v644_v30 = vand.u32 4294901760, %v4193_v59  ;;  %v481_v23 = vmul.f32 %v4095_v47, %v466_v55  ;;  %v4201_v24 = vsub.f32 %v495_v39, %v4190_v29  ;;  %v467_v35 = vmul.f32 %v3463_v62, %v443_v4 }
 0x102   : > { %3129 = vmatpush3.bf16.msra.mxu0 %v4063_v26  ;;  %3296 = vmatpush3.bf16.msra.mxu1 %v3970_v6  ;;  %v4616_v3 = vand.u32 4294901760, %v3786_v20  ;;  %v4617_v55 = vand.u32 4294901760, %v3791_v21  ;;  %v4620_v20 = vand.u32 4294901760, %v3863_v52  ;;  %v4621_v21 = vand.u32 4294901760, %v3868_v53 }
 0x103   : > { %3131 = vmatprep.subr.bf16.mxu0 %v4067_v57  ;;  %3289 = vmatprep.subr.bf16.mxu1 %v3997_v56  ;;  %v645_v50 = vsub.f32 %v4193_v59, %v644_v30  ;;  %v496_v1 = vadd.f32 %v4102_v49, %v481_v23  ;;  %v654_v41 = vand.u32 4294901760, %v4201_v24  ;;  %v482_v17 = vmul.f32 %v4095_v47, %v467_v35 }
 0x104   : > { %v3178_v62 = vpack.c.bf16 %v4617_v55, %v4616_v3  ;;  %v4624_v52 = vand.u32 4294901760, %v3945_v11  ;;  %v4625_v53 = vand.u32 4294901760, %v3950_v12 }
 0x105   : > { %v646_v38 = vand.u32 4294901760, %v645_v50  ;;  %v4213_v16 = vand.u32 4294901760, %v496_v1  ;;  %v655_v26 = vsub.f32 %v4201_v24, %v654_v41  ;;  %v497_v45 = vadd.f32 %v4102_v49, %v482_v17 }
 0x106   : > { %3133 = vmatpush3.bf16.msra.mxu0 %v4067_v57  ;;  %3297 = vmatpush3.bf16.msra.mxu1 %v3997_v56 }
 0x107   : > { %2700 = vmatprep.mubr.f32.mxu1 %v646_v38  ;;  %2747 = vmatprep.mubr.f32.mxu0 %v4213_v16  ;;  %v656_v43 = vand.u32 4294901760, %v655_v26  ;;  %v4222_v22 = vand.u32 4294901760, %v497_v45  ;;  %v4225_v47 = vsub.f32 %v496_v1, %v4213_v16 }
 0x108   : > { %3135 = vmatprep.subr.bf16.mxu0 %v4071_v60  ;;  %3290 = vmatprep.subr.bf16.mxu1 %v4017_v33 }
 0x109   : > { %2701 = vmatmul.mubr.f32.gmra.mrb[4].mxu1 %v656_v43  ;;  %2748 = vmatmul.mubr.f32.gmra.mrb[6].mxu0 %v4222_v22  ;;  %v664_v57 = vand.u32 4294901760, %v4225_v47  ;;  %v4232_v49 = vsub.f32 %v497_v45, %v4222_v22 }
 0x10a   : > { %3137 = vmatpush3.bf16.msra.mxu0 %v4071_v60  ;;  %3298 = vmatpush3.bf16.msra.mxu1 %v4017_v33 }
 0x10b   : > { %2782 = vmatprep.mubr.f32.mxu0 %v4123_v42  ;;  %3139 = vmatprep.subr.bf16.mxu0 %v4075_v31  ;;  %v665_v28 = vsub.f32 %v4225_v47, %v664_v57  ;;  %v674_v39 = vand.u32 4294901760, %v4232_v49  ;;  %v4615_v42 = vand.u32 4294901760, %v3758_v10  ;;  %v4619_v10 = vand.u32 4294901760, %v3830_v37 }
 0x10c   : > { %3291 = vmatprep.subr.bf16.mxu1 %v4031_v54  ;;  %v4623_v37 = vand.u32 4294901760, %v3896_v2  ;;  %v4628_v2 = vand.u32 4294901760, %v4002_v5 }
 0x10d   : > { %v666_v13 = vand.u32 4294901760, %v665_v28  ;;  %v675_v4 = vsub.f32 %v4232_v49, %v674_v39 }
 0x10e   : > { %3141 = vmatpush3.bf16.msra.mxu0 %v4075_v31  ;;  %3299 = vmatpush3.bf16.msra.mxu1 %v4031_v54  ;;  %v4614_v31 = vand.u32 4294901760, %v3753_v8  ;;  %v4618_v8 = vand.u32 4294901760, %v3822_v34  ;;  %v4622_v34 = vand.u32 4294901760, %v3891_v63 }
 0x10f   : > { %2703 = vmatprep.mubr.f32.mxu1 %v666_v13  ;;  %3143 = vmatprep.subr.bf16.mxu0 %v3852_v48  ;;  %v676_v60 = vand.u32 4294901760, %v675_v4 }
 0x110   : > { %3292 = vmatprep.subr.bf16.mxu1 %v4035_v58  ;;  %v3182_v23 = vpack.c.bf16 %v4619_v10, %v4618_v8 }
 0x111   : > { %2783 = vmatmul.mubr.f32.vlgmr.msra.gmra.mrb[0].mxu0 %v4136_v14  ;;  %2704 = vmatmul.mubr.f32.gmra.mrb[6].mxu1 %v676_v60  ;;  %v3186_v14 = vpack.c.bf16 %v4621_v21, %v4620_v20 }
 0x112   : > { %2785 = vmatprep.mubr.f32.mxu0 %v4159_v19  ;;  %3145 = vmatpush3.bf16.msra.mxu0 %v3852_v48  ;;  %v3194_v19 = vpack.c.bf16 %v4625_v53, %v4624_v52 }
 0x113   : > { %3300 = vmatpush3.bf16.msra.mxu1 %v4035_v58  ;;  %2920 = vmatprep.mubr.f32.mxu1 %v4179_v0 }
 0x114   : > { %3147 = vmatprep.subr.bf16.mxu0 %v3932_v40  ;;  %3293 = vmatprep.subr.bf16.mxu1 %v4044_v7 }
 0x115   : > { %2786 = vmatmul.mubr.f32.gmra.mrb[2].mxu0 %v4165_v18  ;;  %v4627_v18 = vand.u32 4294901760, %v3981_v32  ;;  %v1473_v32 = vld [vmem:[%s4587_s6 + $0x10] sm:$0xff] }
 0x116   : > { %2788 = vmatprep.mubr.f32.mxu0 %v4193_v59  ;;  %3149 = vmatpush3.bf16.msra.mxu0 %v3932_v40 }
 0x117   : > { %3301 = vmatpush3.bf16.msra.mxu1 %v4044_v7  ;;  %3151 = vmatprep.subr.bf16.mxu0 %v3970_v6 }
 0x119   : > { %2789 = vmatmul.mubr.f32.gmra.mrb[4].mxu0 %v4201_v24 }
 0x11a   : > { %2921 = vmatmul.mubr.f32.vlgmr.msra.gmra.mrb[8].mxu1 %v4190_v29  ;;  %2791 = vmatprep.mubr.f32.mxu0 %v4225_v47 }
 0x11b   : > { %3153 = vmatpush3.bf16.msra.mxu0 %v3970_v6  ;;  %2923 = vmatprep.mubr.f32.mxu1 %v4213_v16 }
 0x11c   : > { %3155 = vmatprep.subr.bf16.mxu0 %v3997_v56 }
 0x11d   : > { %2792 = vmatmul.mubr.f32.gmra.mrb[6].mxu0 %v4232_v49 }
 0x11e   : > { %2924 = vmatmul.mubr.f32.gmra.mrb[10].mxu1 %v4222_v22  ;;  %2826 = vmatprep.mubr.f32.mxu0 %v604_v9  ;;  %v3174_v9 = vpack.c.bf16 %v4615_v42, %v4614_v31 }
 0x11f   : > { %3157 = vmatpush3.bf16.msra.mxu0 %v3997_v56 }
 0x120   : > { %3159 = vmatprep.subr.bf16.mxu0 %v4017_v33 }
 0x123   : > { %3161 = vmatpush3.bf16.msra.mxu0 %v4017_v33 }
 0x124   : > { %3163 = vmatprep.subr.bf16.mxu0 %v4031_v54 }
 0x127   : > { %3165 = vmatpush3.bf16.msra.mxu0 %v4031_v54 }
 0x128   : > { %3167 = vmatprep.subr.bf16.mxu0 %v4035_v58 }
 0x12b   : > { %3169 = vmatpush3.bf16.msra.mxu0 %v4035_v58 }
 0x12c   : > { %3171 = vmatprep.subr.bf16.mxu0 %v4044_v7 }
 0x12f   : > { %3173 = vmatpush3.bf16.msra.mxu0 %v4044_v7 }
 0x130   : > { %3175 = vmatprep.subr.bf16.mxu0 %v3174_v9 }
 0x132   : > { %2827 = vmatmul.mubr.f32.vlgmr.msra.gmra.mrb[0].mxu0 %v614_v27  ;;  %v3190_v27 = vpack.c.bf16 %v4623_v37, %v4622_v34 }
 0x133   : > { %2829 = vmatprep.mubr.f32.mxu0 %v624_v44  ;;  %3177 = vmatpush3.bf16.msra.mxu0 %v3174_v9  ;;  %v4626_v44 = vand.u32 4294901760, %v3973_v36 }
 0x134   : > { %3179 = vmatprep.subr.bf16.mxu0 %v3178_v62 }
 0x135   : > { %v3198_v63 = vpack.c.bf16 %v4627_v18, %v4626_v44 }
 0x136   : > { %2830 = vmatmul.mubr.f32.gmra.mrb[2].mxu0 %v634_v46  ;;  %v4629_v46 = vld [vmem:[#allocation8_spill] sm:$0xff] }
 0x137   : > { %2832 = vmatprep.mubr.f32.mxu0 %v644_v30  ;;  %3181 = vmatpush3.bf16.msra.mxu0 %v3178_v62  ;;  %v4630_v59 = vand.u32 4294901760, %v4629_v46  ;;  %v2437_v62 = vld [vmem:[%s4586_s5] ss:$0 sm:$0xff] }
 0x138   : > { %3183 = vmatprep.subr.bf16.mxu0 %v3182_v23 }
 0x139   : > { %v3202_v30 = vpack.c.bf16 %v4630_v59, %v4628_v2 }
 0x13a   : > { %2833 = vmatmul.mubr.f32.gmra.mrb[4].mxu0 %v654_v41 }
 0x13b   : > { %2835 = vmatprep.mubr.f32.mxu0 %v664_v57  ;;  %3185 = vmatpush3.bf16.msra.mxu0 %v3182_v23 }
 0x13c   : > { %3187 = vmatprep.subr.bf16.mxu0 %v3186_v14 }
 0x13e   : > { %2836 = vmatmul.mubr.f32.gmra.mrb[6].mxu0 %v674_v39 }
 0x13f   : > { %3189 = vmatpush3.bf16.msra.mxu0 %v3186_v14  ;;  %2870 = vmatprep.mubr.f32.mxu0 %v4113_v25 }
 0x140   : > { %3191 = vmatprep.subr.bf16.mxu0 %v3190_v27 }
 0x143   : > { %3193 = vmatpush3.bf16.msra.mxu0 %v3190_v27 }
 0x144   : > { %3195 = vmatprep.subr.bf16.mxu0 %v3194_v19 }
 0x147   : > { %3197 = vmatpush3.bf16.msra.mxu0 %v3194_v19 }
 0x148   : > { %3199 = vmatprep.subr.bf16.mxu0 %v3198_v63 }
 0x14b   : > { %3201 = vmatpush3.bf16.msra.mxu0 %v3198_v63 }
 0x14c   : > { %3203 = vmatprep.subr.bf16.mxu0 %v3202_v30 }
 0x14f   : > { %3205 = vmatpush3.bf16.msra.mxu0 %v3202_v30 }
 0x150   : > { %3207 = vmatprep.subr.bf16.mxu0 %v3852_v48 }
 0x152   : > { %2871 = vmatmul.mubr.f32.vlgmr.msra.gmra.mrb[0].mxu0 %v4127_v61 }
 0x153   : > { %2873 = vmatprep.mubr.f32.mxu0 %v4145_v15  ;;  %3209 = vmatpush3.bf16.msra.mxu0 %v3852_v48  ;;  %v1471_v48 = vld [vmem:[%s4587_s6] sm:$0xff] }
 0x154   : > { %3211 = vmatprep.subr.bf16.mxu0 %v3932_v40  ;;  %v1508_v11 = vand.u32 4294901760, %v1471_v48 }
 0x156   : > { %2874 = vmatmul.mubr.f32.gmra.mrb[2].mxu0 %v4156_v51 }
 0x157   : > { %2876 = vmatprep.mubr.f32.mxu0 %v4179_v0  ;;  %3213 = vmatpush3.bf16.msra.mxu0 %v3932_v40  ;;  %v1472_v40 = vld [vmem:[%s4587_s6 + $0x8] sm:$0xff] }
 0x158   : > { %3215 = vmatprep.subr.bf16.mxu0 %v3970_v6  ;;  %v1511_v12 = vand.u32 4294901760, %v1472_v40 }
 0x15a   : > { %2877 = vmatmul.mubr.f32.gmra.mrb[4].mxu0 %v4190_v29  ;;  %v4357_v36 = vpack.c.bf16 %v1511_v12, %v1508_v11 }
 0x15b   : > { %2879 = vmatprep.mubr.f32.mxu0 %v4213_v16  ;;  %3217 = vmatpush3.bf16.msra.mxu0 %v3970_v6 }
 0x15c   : > { %3219 = vmatprep.subr.bf16.mxu0 %v3997_v56  ;;  %3239 = vmatprep.subr.bf16.mxu1 %v4357_v36 }
 0x15d   : > { %3241 = vmatpush3.bf16.msra.mxu1 %v4357_v36 }
 0x15e   : > { %2880 = vmatmul.mubr.f32.gmra.mrb[6].mxu0 %v4222_v22 }
 0x15f   : > { %3221 = vmatpush3.bf16.msra.mxu0 %v3997_v56  ;;  %2914 = vmatprep.mubr.f32.mxu0 %v4113_v25  ;;  %v1474_v56 = vld [vmem:[%s4587_s6 + $0x18] sm:$0xff] }
 0x160   : > { %3223 = vmatprep.subr.bf16.mxu0 %v4017_v33 }
 0x163   : > { %3225 = vmatpush3.bf16.msra.mxu0 %v4017_v33  ;;  %v1514_v33 = vand.u32 4294901760, %v1473_v32 }
 0x164   : > { %3227 = vmatprep.subr.bf16.mxu0 %v4031_v54 }
 0x165   : > { %v1672_v35 = vsub.f32 %v1473_v32, %v1514_v33 }
 0x167   : > { %3229 = vmatpush3.bf16.msra.mxu0 %v4031_v54  ;;  %v1517_v54 = vand.u32 4294901760, %v1474_v56  ;;  %v1673_v17 = vand.u32 4294901760, %v1672_v35 }
 0x168   : > { %3231 = vmatprep.subr.bf16.mxu0 %v4035_v58 }
 0x169   : > { %v1679_v50 = vsub.f32 %v1474_v56, %v1517_v54  ;;  %v1674_v43 = vsub.f32 %v1672_v35, %v1673_v17 }
 0x16b   : > { %3233 = vmatpush3.bf16.msra.mxu0 %v4035_v58  ;;  %v4367_v58 = vpack.c.bf16 %v1517_v54, %v1514_v33  ;;  %v1680_v38 = vand.u32 4294901760, %v1679_v50  ;;  %v1675_v47 = vand.u32 4294901760, %v1674_v43  ;;  %v4378_v4 = vpack.c.bf16 %v1679_v50, %v1672_v35 }
 0x16c   : > { %3235 = vmatprep.subr.bf16.mxu0 %v4044_v7 }
 0x16d   : > { %3243 = vmatprep.subr.bf16.mxu1 %v4367_v58  ;;  %v1681_v22 = vsub.f32 %v1679_v50, %v1680_v38  ;;  %v4382_v55 = vpack.c.bf16 %v1680_v38, %v1673_v17 }
 0x16e   : > { %3245 = vmatpush3.bf16.msra.mxu1 %v4367_v58 }
 0x16f   : > { %3237 = vmatpush3.bf16.msra.mxu0 %v4044_v7  ;;  %v1682_v57 = vand.u32 4294901760, %v1681_v22 }
 0x171   : > { %v4374_v49 = vpack.c.bf16 %v1682_v57, %v1675_v47 }
 0x172   : > { %2915 = vmatmul.mubr.f32.vlgmr.msra.gmra.mrb[0].mxu0 %v4127_v61  ;;  %v1658_v61 = vsub.f32 %v1471_v48, %v1508_v11 }
 0x173   : > { %2917 = vmatprep.mubr.f32.mxu0 %v4145_v15  ;;  %v1665_v15 = vsub.f32 %v1472_v40, %v1511_v12 }
 0x175   : > { %v1666_v0 = vand.u32 4294901760, %v1665_v15  ;;  %v4376_v39 = vpack.c.bf16 %v1665_v15, %v1658_v61 }
 0x176   : > { %2918 = vmatmul.mubr.f32.gmra.mrb[2].mxu0 %v4156_v51  ;;  %v1659_v51 = vand.u32 4294901760, %v1658_v61 }
 0x177   : > { %v1667_v24 = vsub.f32 %v1665_v15, %v1666_v0 }
 0x178   : > { %v1660_v29 = vsub.f32 %v1658_v61, %v1659_v51  ;;  %v4380_v3 = vpack.c.bf16 %v1666_v0, %v1659_v51 }
 0x179   : > { %v1668_v41 = vand.u32 4294901760, %v1667_v24 }
 0x17a   : > { %v1661_v1 = vand.u32 4294901760, %v1660_v29 }
 0x17c   : > { %v4371_v45 = vpack.c.bf16 %v1668_v41, %v1661_v1 }
 0x17e   : > { %3247 = vmatprep.subr.bf16.mxu1 %v4371_v45 }
 0x1cc   : > { %v4353_v5 = vpop.f32.mrb[0].mxu1 }
 0x1cd   : > { %v4355_v6 = vpop.f32.mrb[1].mxu1  ;;  %v619_v59 = vadd.f32 %v4353_v5, %v2437_v62 }
 0x1ce   : > { %v609_v30 = vadd.f32 %v2437_v62, %v4355_v6 }
 0x1d4   : > { %v2699_v7 = vpop.f32.mrb[2].mxu1 }
 0x1d5   : > { %v628_v25 = vpop.f32.mrb[3].mxu1  ;;  %v639_v54 = vadd.f32 %v2699_v7, %v2437_v62 }
 0x1d6   : > { %v629_v15 = vadd.f32 %v2437_v62, %v628_v25 }
 0x1dc   : > { %v2702_v16 = vpop.f32.mrb[4].mxu1 }
 0x1dd   : > { %v648_v26 = vpop.f32.mrb[5].mxu1  ;;  %v659_v8 = vadd.f32 %v2702_v16, %v2437_v62 }
 0x1de   : > { %v649_v10 = vadd.f32 %v2437_v62, %v648_v26 }
 0x1e4   : > { %v2705_v28 = vpop.f32.mrb[6].mxu1 }
 0x1e5   : > { %v668_v13 = vpop.f32.mrb[7].mxu1  ;;  %v679_v34 = vadd.f32 %v2705_v28, %v2437_v62 }
 0x1e6   : > { %v669_v27 = vadd.f32 %v2437_v62, %v668_v13 }
 0x1ed   : > { %v2922_v60 = vpop.f32.mrb[8].mxu1 }
 0x1ee   : > { %v1441_v31 = vpop.f32.mrb[9].mxu1 }
 0x1f1   : > { %v2925_v42 = vpop.f32.mrb[10].mxu1 }
 0x1f2   : > { %v1453_v9 = vpop.f32.mrb[11].mxu1 }
 0x22d   : > { %v2878_v23 = vpop.f32.mrb[4].mxu0 }
 0x22e   : > { %v3311_v20 = vadd.f32 %v2878_v23, %v659_v8  ;;  %v1312_v21 = vpop.f32.mrb[5].mxu0 }
 0x22f   : > { %v3314_v14 = vadd.f32 %v1312_v21, %v649_v10 }
 0x230   : > { %v3312_v37 = vadd.f32 %v3311_v20, %v2922_v60 }
 0x231   : > { %v3315_v52 = vadd.f32 %v3314_v14, %v1441_v31  ;;  %v2881_v53 = vpop.f32.mrb[6].mxu0 }
 0x232   : > { %v3317_v19 = vadd.f32 %v2881_v53, %v679_v34  ;;  %v1324_v44 = vpop.f32.mrb[7].mxu0  ;;  %v1468_v40 = vmax.f32 %v3312_v37, 0.0 }
 0x233   : > { %v3320_v18 = vadd.f32 %v1324_v44, %v669_v27  ;;  %v1467_v46 = vmax.f32 %v3315_v52, 0.0 }
 0x234   : > { %v3318_v63 = vadd.f32 %v3317_v19, %v2925_v42  ;;  %v1499_v24 = vsel %vm1482_vm0, %v1468_v40, 0 }
 0x235   : > { %v3321_v2 = vadd.f32 %v3320_v18, %v1453_v9  ;;  %v1496_v11 = vsel %vm1482_vm0, %v1467_v46, 0  ;;  %v4400_v16 = vand.u32 4294901760, %v1499_v24 }
 0x236   : > { %v4390_v51 = vand.u32 4294901760, %v1496_v11  ;;  %v1470_v5 = vmax.f32 %v3318_v63, 0.0 }
 0x237   : > { %v1469_v56 = vmax.f32 %v3321_v2, 0.0  ;;  %v4423_v8 = vsub.f32 %v1499_v24, %v4400_v16 }
 0x238   : > { %v4403_v26 = vsub.f32 %v1496_v11, %v4390_v51  ;;  %v1505_v47 = vsel %vm1482_vm0, %v1470_v5, 0 }
 0x239   : > { %v1502_v1 = vsel %vm1482_vm0, %v1469_v56, 0  ;;  %v4425_v10 = vand.u32 4294901760, %v1505_v47  ;;  %v1628_v63 = vand.u32 4294901760, %v4423_v8 }
 0x23a   : > { %v4409_v57 = vand.u32 4294901760, %v1502_v1  ;;  %v1618_v37 = vand.u32 4294901760, %v4403_v26 }
 0x23b   : > { %v4443_v19 = vsub.f32 %v1505_v47, %v4425_v10  ;;  %v1629_v40 = vsub.f32 %v4423_v8, %v1628_v63  ;;  %v2305_v47 = vld [vmem:[%s3723_s25 + $0x20] sm:$0xff] }
 0x23c   : > { %v4434_v21 = vsub.f32 %v1502_v1, %v4409_v57  ;;  %v1619_v46 = vsub.f32 %v4403_v26, %v1618_v37  ;;  %v2303_v1 = vld [vmem:[%s3723_s25 + $0x10] sm:$0xff] }
 0x23d   : > { %v1648_v11 = vand.u32 4294901760, %v4443_v19  ;;  %v1630_v56 = vand.u32 4294901760, %v1629_v40 }
 0x245   : > { %v2916_v48 = vpop.f32.mrb[0].mxu0 }
 0x246   : > { %v3303_v12 = vadd.f32 %v2916_v48, %v619_v59  ;;  %v1417_v32 = vpop.f32.mrb[1].mxu0  ;;  %v1638_v59 = vand.u32 4294901760, %v4434_v21 }
 0x247   : > { %v3305_v33 = vadd.f32 %v1417_v32, %v609_v30 }
 0x248   : > { %v1464_v61 = vmax.f32 %v3303_v12, 0.0  ;;  %v1620_v12 = vand.u32 4294901760, %v1619_v46  ;;  %v1639_v32 = vsub.f32 %v4434_v21, %v1638_v59 }
 0x249   : > { %v1463_v0 = vmax.f32 %v3305_v33, 0.0  ;;  %v2919_v29 = vpop.f32.mrb[2].mxu0  ;;  %v1649_v33 = vsub.f32 %v4443_v19, %v1648_v11 }
 0x24a   : > { %v1487_v6 = vsel %vm1482_vm0, %v1464_v61, 0  ;;  %v3307_v35 = vadd.f32 %v2919_v29, %v639_v54  ;;  %v1429_v50 = vpop.f32.mrb[3].mxu0  ;;  %v2301_v61 = vld [vmem:[%s3723_s25] sm:$0xff] }
 0x24b   : > { %v4395_v41 = vand.u32 4294901760, %v1487_v6  ;;  %v1484_v17 = vsel %vm1482_vm0, %v1463_v0, 0  ;;  %v3309_v7 = vadd.f32 %v1429_v50, %v629_v15  ;;  %v1650_v54 = vand.u32 4294901760, %v1649_v33 }
 0x24c   : > { %v4398_v38 = vand.u32 4294901760, %v1484_v17  ;;  %v1466_v25 = vmax.f32 %v3307_v35, 0.0 }
 0x24d   : > { %v4406_v43 = vsub.f32 %v1487_v6, %v4395_v41  ;;  %v1465_v22 = vmax.f32 %v3309_v7, 0.0  ;;  %v2304_v6 = vld [vmem:[%s3723_s25 + $0x18] sm:$0xff] }
 0x24e   : > { %v4412_v28 = vsub.f32 %v1484_v17, %v4398_v38  ;;  %v1493_v13 = vsel %vm1482_vm0, %v1466_v25, 0 }
 0x24f   : > { %v1588_v60 = vand.u32 4294901760, %v4406_v43  ;;  %v4416_v31 = vand.u32 4294901760, %v1493_v13  ;;  %v1490_v42 = vsel %vm1482_vm0, %v1465_v22, 0 }
 0x250   : > { %v4419_v9 = vand.u32 4294901760, %v1490_v42  ;;  %v1578_v62 = vand.u32 4294901760, %v4412_v28 }
 0x251   : > { %v1589_v23 = vsub.f32 %v4406_v43, %v1588_v60  ;;  %v4431_v20 = vsub.f32 %v1493_v13, %v4416_v31 }
 0x252   : > { %v1597_v14 = vsub.f32 %v1490_v42, %v4419_v9  ;;  %v1579_v34 = vsub.f32 %v4412_v28, %v1578_v62 }
 0x253   : > { %v1608_v27 = vand.u32 4294901760, %v4431_v20  ;;  %v1590_v44 = vand.u32 4294901760, %v1589_v23 }
 0x254   : > { %v1580_v52 = vand.u32 4294901760, %v1579_v34  ;;  %v1598_v53 = vand.u32 4294901760, %v1597_v14 }
 0x255   : > { %v1609_v18 = vsub.f32 %v4431_v20, %v1608_v27 }
 0x256   : > { %2934 = vmatprep.mubr.f32.mxu1 %v1580_v52  ;;  %v1599_v2 = vsub.f32 %v1597_v14, %v1598_v53 }
 0x257   : > { %2935 = vmatmul.mubr.f32.vlgmr.msra.gmra.mrb[12].mxu1 %v1590_v44  ;;  %v1610_v48 = vand.u32 4294901760, %v1609_v18 }
 0x258   : > { %3249 = vmatpush3.bf16.msra.mxu1 %v4371_v45  ;;  %v1600_v30 = vand.u32 4294901760, %v1599_v2  ;;  %v1640_v45 = vand.u32 4294901760, %v1639_v32 }
 0x259   : > { %3251 = vmatprep.subr.bf16.mxu1 %v4374_v49 }
 0x25a   : > { %2937 = vmatprep.mubr.f32.mxu1 %v1600_v30 }
 0x25b   : > { %2938 = vmatmul.mubr.f32.gmra.mrb[14].mxu1 %v1610_v48 }
 0x25c   : > { %2940 = vmatprep.mubr.f32.mxu1 %v1620_v12  ;;  %3253 = vmatpush3.bf16.msra.mxu1 %v4374_v49 }
 0x25d   : > { %3255 = vmatprep.subr.bf16.mxu1 %v4376_v39 }
 0x25f   : > { %2941 = vmatmul.mubr.f32.gmra.mrb[16].mxu1 %v1630_v56 }
 0x260   : > { %2943 = vmatprep.mubr.f32.mxu1 %v1640_v45 }
 0x263   : > { %2944 = vmatmul.mubr.f32.gmra.mrb[18].mxu1 %v1650_v54 }
 0x264   : > { %2954 = vmatprep.mubr.f32.mxu1 %v4398_v38 }
 0x267   : > { %2955 = vmatmul.mubr.f32.vlgmr.msra.gmra.mrb[12].mxu1 %v4395_v41 }
 0x268   : > { %3257 = vmatpush3.bf16.msra.mxu1 %v4376_v39  ;;  %2957 = vmatprep.mubr.f32.mxu1 %v4419_v9 }
 0x269   : > { %3259 = vmatprep.subr.bf16.mxu1 %v4378_v4 }
 0x26b   : > { %2958 = vmatmul.mubr.f32.gmra.mrb[14].mxu1 %v4416_v31 }
 0x26c   : > { %2960 = vmatprep.mubr.f32.mxu1 %v4390_v51  ;;  %3261 = vmatpush3.bf16.msra.mxu1 %v4378_v4  ;;  %v2302_v4 = vld [vmem:[%s3723_s25 + $0x8] sm:$0xff] }
 0x26d   : > { %3263 = vmatprep.subr.bf16.mxu1 %v4357_v36 }
 0x26f   : > { %2961 = vmatmul.mubr.f32.gmra.mrb[16].mxu1 %v4400_v16 }
 0x270   : > { %2963 = vmatprep.mubr.f32.mxu1 %v4409_v57 }
 0x273   : > { %2964 = vmatmul.mubr.f32.gmra.mrb[18].mxu1 %v4425_v10 }
 0x274   : > { %2974 = vmatprep.mubr.f32.mxu1 %v4412_v28 }
 0x277   : > { %2975 = vmatmul.mubr.f32.vlgmr.msra.gmra.mrb[12].mxu1 %v4406_v43 }
 0x278   : > { %3265 = vmatpush3.bf16.msra.mxu1 %v4357_v36  ;;  %2977 = vmatprep.mubr.f32.mxu1 %v1597_v14 }
 0x279   : > { %3267 = vmatprep.subr.bf16.mxu1 %v4367_v58 }
 0x27b   : > { %2978 = vmatmul.mubr.f32.gmra.mrb[14].mxu1 %v4431_v20 }
 0x27c   : > { %2980 = vmatprep.mubr.f32.mxu1 %v4403_v26  ;;  %3269 = vmatpush3.bf16.msra.mxu1 %v4367_v58  ;;  %v2306_v26 = vld [vmem:[%s3723_s25 + $0x28] sm:$0xff] }
 0x27d   : > { %3271 = vmatprep.subr.bf16.mxu1 %v4380_v3 }
 0x27f   : > { %2981 = vmatmul.mubr.f32.gmra.mrb[16].mxu1 %v4423_v8 }
 0x280   : > { %2983 = vmatprep.mubr.f32.mxu1 %v4434_v21 }
 0x283   : > { %2984 = vmatmul.mubr.f32.gmra.mrb[18].mxu1 %v4443_v19 }
 0x284   : > { %2994 = vmatprep.mubr.f32.mxu1 %v1578_v62 }
 0x287   : > { %2995 = vmatmul.mubr.f32.vlgmr.msra.gmra.mrb[12].mxu1 %v1588_v60 }
 0x288   : > { %3273 = vmatpush3.bf16.msra.mxu1 %v4380_v3  ;;  %2997 = vmatprep.mubr.f32.mxu1 %v1598_v53 }
 0x289   : > { %3275 = vmatprep.subr.bf16.mxu1 %v4382_v55 }
 0x28b   : > { %2998 = vmatmul.mubr.f32.gmra.mrb[14].mxu1 %v1608_v27 }
 0x28c   : > { %3000 = vmatprep.mubr.f32.mxu1 %v1618_v37  ;;  %3277 = vmatpush3.bf16.msra.mxu1 %v4382_v55 }
 0x28d   : > { %3279 = vmatprep.subr.bf16.mxu1 %v4357_v36 }
 0x28f   : > { %3001 = vmatmul.mubr.f32.gmra.mrb[16].mxu1 %v1628_v63 }
 0x290   : > { %3003 = vmatprep.mubr.f32.mxu1 %v1638_v59 }
 0x293   : > { %3004 = vmatmul.mubr.f32.gmra.mrb[18].mxu1 %v1648_v11 }
 0x294   : > { %3014 = vmatprep.mubr.f32.mxu1 %v4398_v38 }
 0x297   : > { %3015 = vmatmul.mubr.f32.vlgmr.msra.gmra.mrb[12].mxu1 %v4395_v41 }
 0x298   : > { %3281 = vmatpush3.bf16.msra.mxu1 %v4357_v36  ;;  %3017 = vmatprep.mubr.f32.mxu1 %v4419_v9  ;;  %v2438_v36 = vld [vmem:[%s4588_s7] ss:$0 sm:$0xff] }
 0x299   : > { %3283 = vmatprep.subr.bf16.mxu1 %v4367_v58 }
 0x29b   : > { %3018 = vmatmul.mubr.f32.gmra.mrb[14].mxu1 %v4416_v31 }
 0x29c   : > { %3020 = vmatprep.mubr.f32.mxu1 %v4390_v51  ;;  %3285 = vmatpush3.bf16.msra.mxu1 %v4367_v58 }
 0x29f   : > { %3021 = vmatmul.mubr.f32.gmra.mrb[16].mxu1 %v4400_v16 }
 0x2a0   : > { %3023 = vmatprep.mubr.f32.mxu1 %v4409_v57 }
 0x2a3   : > { %3024 = vmatmul.mubr.f32.gmra.mrb[18].mxu1 %v4425_v10 }
 0x2a4   : > { %3034 = vmatprep.mubr.f32.mxu1 %v4398_v38 }
 0x2a7   : > { %3035 = vmatmul.mubr.f32.vlgmr.msra.gmra.mrb[12].mxu1 %v4395_v41 }
 0x2a8   : > { %3037 = vmatprep.mubr.f32.mxu1 %v4419_v9  ;;  %v2308_v9 = vld [vmem:[%s3723_s25 + $0x38] sm:$0xff] }
 0x2ab   : > { %3038 = vmatmul.mubr.f32.gmra.mrb[14].mxu1 %v4416_v31 }
 0x2ac   : > { %3040 = vmatprep.mubr.f32.mxu1 %v4390_v51 }
 0x2af   : > { %3041 = vmatmul.mubr.f32.gmra.mrb[16].mxu1 %v4400_v16 }
 0x2b0   : > { %3043 = vmatprep.mubr.f32.mxu1 %v4409_v57 }
 0x2b3   : > { %3044 = vmatmul.mubr.f32.gmra.mrb[18].mxu1 %v4425_v10  ;;  %v2307_v10 = vld [vmem:[%s3723_s25 + $0x30] sm:$0xff]  ;;  %s3565_s25 = smov [#allocation5]  }
 0x2b4   : > { %s3498_s20 = sshll.u32 %s3565_s25, 4  ;;  %s3499_s20 = int_to_ptr.vmem [resolvable:$false] %s3498_s20 }
 0x2b5   : > { %s3500_s26 = scalar_lea.vmem %s3499_s20, 2048  ;;  %p3501_p10 = scmp.lt.s32.totalorder %s4529_s23, %s3499_s20 }
 0x2b6   : > { %p3502_p0 = scmp.lt.s32.totalorder %s3500_s26, %s3494_s24 }
 0x2b8   : > { %p3503_p2 = por %p3502_p0, %p3501_p10 }
 0x2ba   : > { %p3504_p4 = pnand %p3503_p2, %p3497_p8 }
 0x37a   : > { %v3036_v58 = vpop.f32.mrb[12].mxu1 }
 0x37b   : > { %v3322_v49 = vadd.f32 %v3036_v58, %v2438_v36  ;;  %v2247_v39 = vpop.f32.mrb[13].mxu1 }
 0x37c   : > { %v3323_v3 = vadd.f32 %v2438_v36, %v2247_v39 }
 0x37d   : > { %v2294_v55 = vmul.f32 0.5, %v3322_v49 }
 0x37e   : > { %v2293_v15 = vmul.f32 0.5, %v3323_v3  ;;  %v3039_v51 = vpop.f32.mrb[14].mxu1 }
 0x37f   : > { %v2310_v0 = vadd.f32 %v2302_v4, %v2294_v55  ;;  %v3324_v29 = vadd.f32 %v3039_v51, %v2438_v36  ;;  %v2259_v24 = vpop.f32.mrb[15].mxu1 }
 0x380   : > { %v2309_v5 = vadd.f32 %v2301_v61, %v2293_v15  ;;  %v3325_v35 = vadd.f32 %v2438_v36, %v2259_v24 }
 0x381   : > { %2318 = vst [vmem:[%s4515_s16 + $0x8] sm:$0xff] %v2310_v0  ;;  %v2296_v50 = vmul.f32 0.5, %v3324_v29 }
 0x382   : > { %2317 = vst [vmem:[%s4515_s16] sm:$0xff] %v2309_v5  ;;  %v2295_v41 = vmul.f32 0.5, %v3325_v35  ;;  %v3042_v17 = vpop.f32.mrb[16].mxu1 }
 0x383   : > { %v2312_v7 = vadd.f32 %v2304_v6, %v2296_v50  ;;  %v3326_v38 = vadd.f32 %v3042_v17, %v2438_v36  ;;  %v2271_v25 = vpop.f32.mrb[17].mxu1 }
 0x384   : > { %v2311_v16 = vadd.f32 %v2303_v1, %v2295_v41  ;;  %v3327_v43 = vadd.f32 %v2438_v36, %v2271_v25 }
 0x385   : > { %2320 = vst [vmem:[%s4515_s16 + $0x18] sm:$0xff] %v2312_v7  ;;  %v2298_v22 = vmul.f32 0.5, %v3326_v38 }
 0x386   : > { %2319 = vst [vmem:[%s4515_s16 + $0x10] sm:$0xff] %v2311_v16  ;;  %v2297_v57 = vmul.f32 0.5, %v3327_v43  ;;  %v3045_v28 = vpop.f32.mrb[18].mxu1 }
 0x387   : > { %v2314_v13 = vadd.f32 %v2306_v26, %v2298_v22  ;;  %v3328_v60 = vadd.f32 %v3045_v28, %v2438_v36  ;;  %v2283_v31 = vpop.f32.mrb[19].mxu1 }
 0x388   : > { %v2313_v42 = vadd.f32 %v2305_v47, %v2297_v57  ;;  %v3329_v62 = vadd.f32 %v2438_v36, %v2283_v31 }
 0x389   : > { %2322 = vst [vmem:[%s4515_s16 + $0x28] sm:$0xff] %v2314_v13  ;;  %v2300_v8 = vmul.f32 0.5, %v3328_v60 }
 0x38a   : > { %2321 = vst [vmem:[%s4515_s16 + $0x20] sm:$0xff] %v2313_v42  ;;  %v2299_v23 = vmul.f32 0.5, %v3329_v62 }
 0x38b   : > { %v2316_v20 = vadd.f32 %v2308_v9, %v2300_v8 }
 0x38c   : > { %v2315_v21 = vadd.f32 %v2307_v10, %v2299_v23 }
 0x38d   : > { %2324 = vst [vmem:[%s4515_s16 + $0x38] sm:$0xff] %v2316_v20 }
 0x38e   : > { %2323 = vst [vmem:[%s4515_s16 + $0x30] sm:$0xff] %v2315_v21 }
 0x38f   : > { %3507 = shalt.err (!%p3504_p4)
}
 0x390   : > { %s3508_s10 = scalar_lea.hbm %s4535_s19, 1024  ;;  %s3512_s15 = scalar_lea.hbm %s4589_s8, 2048 }
 0x391   : > { %p3509_p5 = scmp.ne.s32.totalorder %s4535_s19, %s3508_s10  ;;  %p3513_p1 = scmp.lt.u32.totalorder %s4535_s19, %s4589_s8 }
 0x392   : > { %p3514_p3 = scmp.lt.u32.totalorder %s3512_s15, %s3508_s10  ;;  %p3516_p6 = scmp.lt.u32.totalorder %s3508_s10, %s4535_s19 }
 0x393   : > { %p3510_p7 = pnand %p3509_p5, %p4631_p12 }
 0x394   : > { %p3515_p11 = por %p3514_p3, %p3513_p1 }
 0x395   : > { %p3511_p9 = pneg %p3510_p7 }
 0x396   : > { %p3517_p13 = por %p3516_p6, %p3515_p11 }
 0x398   : > { %p3518_p8 = pnand %p3517_p13, %p3511_p9 }
 0x39a   : > { %3521 = shalt.err (!%p3518_p8)
}
 0x39b   : > { %s3566_s24 = smov 128   ;;  %s3567_s25 = smov 8  }
 0x39c   : > { %3400 = dma.vmem_to_hbm [thread:$0]  (%p4631_p12), %s4529_s23, 1024, %s4535_s19, %s2326_s9, %s3566_s24, %s3566_s24, %s3567_s25  }
 0x39d PF: > { %s2354_s20 = sand.u32 1, %s3548_s27   ;;  %p4632_p10 = scmp.ne.s32.totalorder %s4611_s18, 0 }
 0x39e   : > { %p4633_p0 = scmp.ge.s32.totalorder %s3560_s30, 2  ;;  %s2355_s26 = scalar_lea.sflag [#allocation4], %s2354_s20 }
 0x3a0   : > { %p3407_p2 = pnand %p4633_p0, %p4632_p10 }
 0x3a2   : > { %3543 = dma.done.wait (!%p3407_p2), %s2355_s26, 1024  }
 0x3a3   : > { %3545 = vsyncadd (!%p3407_p2), %s2355_s26, 4294966272  ;;  %p21_p4 = scmp.ge.s32.totalorder %s3638_s11, 4   ;;  %s4634_s27 = smov %s3552_s28 }
 0x3a4   : > { %s4635_s28 = smov %s3556_s29  ;;  %s4636_s29 = smov %s3650_s14 }
 0x3a5   : > { %s4637_s30 = smov %s3638_s11  ;;  %23 = sbr.rel (!%p21_p4) target bundleno = 5 (0x5), region = 100 }
 0x3ac   :  { %2360 = vsyncpa [#allocation3], 1 }
 0x3ad   :  { %2362 = vsyncpa [#allocation3 + $0x1], 1 }
 0x3ae   :  { %2363 = vsyncpa [#allocation4], 1 }
 0x3af   :  { %2365 = vsyncpa [#allocation4 + $0x1], 1 }

// kernel: tpu_custom_call.1
= control target key start
LH: loop header
LB: loop body
LE: loop exit
PB: predicated region body
PF: predicated region fallthrough
CT: control target
= control target key end

     0   :  { %13 = vsyncpa [#allocation3], 0  ;;  %s4581_s0 = inlined_call_operand.vmem [shape: f32[128,128], index: 0, kind: input, shape index: {}]   ;;  %s4582_s1 = inlined_call_operand.hbm [shape: f32[128,128], index: 1, kind: input, shape index: {}]   ;;  %s4583_s2 = inlined_call_operand.vmem [shape: f32[1,128], index: 2, kind: input, shape index: {}]   ;;  %s4584_s3 = inlined_call_operand.vmem [shape: f32[1,128], index: 3, kind: input, shape index: {}]   ;;  %s4585_s4 = inlined_call_operand.vmem [shape: f32[128,32], index: 4, kind: input, shape index: {}]   ;;  %s4586_s5 = inlined_call_operand.vmem [shape: f32[1,32], index: 5, kind: input, shape index: {}]   ;;  %s4587_s6 = inlined_call_operand.vmem [shape: f32[32,128], index: 6, kind: input, shape index: {}]   ;;  %s4588_s7 = inlined_call_operand.vmem [shape: f32[1,128], index: 7, kind: input, shape index: {}]   ;;  %s4589_s8 = inlined_call_operand.hbm [shape: f32[128,128], index: 8, kind: output, shape index: {}]  }
   0x1   :  { %15 = vsyncpa [#allocation3 + $0x1], 0 }
   0x2   :  { %16 = vsyncpa [#allocation4], 0 }
   0x3   :  { %18 = vsyncpa [#allocation4 + $0x1], 0  ;;  %s3613_s27 = smov 0   ;;  %s3615_s28 = smov 0  }
   0x4   :  { %s3617_s29 = smov 0   ;;  %s3619_s30 = smov 0  }
   0x5 LB: > { %s3634_s9 = sadd.s32 4294967295, %s3560_s30   ;;  %s2424_s10 = sadd.s32 4294967294, %s3560_s30   ;;  %s3560_s30 = sphi %s3619_s30, %s4637_s30   ;;  %s3556_s29 = sphi %s3617_s29, %s4636_s29   ;;  %s3552_s28 = sphi %s3615_s28, %s4635_s28   ;;  %s3548_s27 = sphi %s3613_s27, %s4634_s27  }
   0x6   : > { %s3638_s11 = sadd.s32 1, %s3560_s30   ;;  %s57_s12 = sadd.s32 1, %s3556_s29 }
   0x7   : > { %s54_s13 = ssub.s32 %s3560_s30, %s3638_s11  ;;  %p64_p0 = scmp.ne.s32.totalorder %s3556_s29, %s3552_s28 }
   0x8   : > { %p55_p1 = scmp.eq.s32.totalorder %s54_s13, 0  ;;  %p65_p2 = scmp.eq.s32.totalorder %s3560_s30, 0 }
   0x9   : > { %p70_p3 = scmp.ne.s32.totalorder %s3552_s28, %s3548_s27  ;;  %p71_p4 = scmp.eq.s32.totalorder %s3634_s9, 0 }
   0xa   : > { %s3650_s14 = scalar_select %p55_p1, %s3556_s29, %s57_s12  }
   0xb   : > { %p3652_p5 = por %p65_p2, %p64_p0  ;;  %p3656_p6 = por %p71_p4, %p70_p3 }
   0xc   : > { %p220_p7 = scmp.eq.s32.totalorder %s3634_s9, 1  ;;  %p226_p8 = scmp.eq.s32.totalorder %s2424_s10, 1 }
   0xd   : > { %p3410_p10 = scmp.lt.s32.totalorder %s3560_s30, 2  ;;  %s273_s19 = sand.u32 1, %s3556_s29  }
   0xe   : > { %p3663_p11 = por %p220_p7, %p64_p0  ;;  %p3667_p12 = por %p226_p8, %p70_p3 }
   0xf   : > { %s2444_s20 = sshll.u32 %s3560_s30, 10  ;;  %s2427_s21 = sshll.u32 %s273_s19, 6 }
  0x10   : > { %s4610_s17 = scalar_select %p3663_p11, 1, 0 }
  0x11   : > { %s4611_s18 = scalar_select %p3667_p12, 1, 0 }
  0x12   : > { %s3676_s24 = scalar_lea.hbm %s4582_s1, %s2444_s20  ;;  %s277_s25 = scalar_lea.vmem [#allocation2], %s2427_s21 }
  0x13   : > { %s284_s26 = sshll.u32 %s277_s25, 4  ;;  %p3680_p13 = pnand %p3410_p10, %p3652_p5  ;;  %s3684_s26 = int_to_ptr.vmem [resolvable:$true] %s284_s26 }
  0x14   : > { %s3686_s12 = scalar_lea.sflag [#allocation3], %s273_s19  ;;  %s3464_s13 = scalar_lea.hbm %s3676_s24, 1024 }
  0x15   : > { %p3465_p0 = scmp.ne.s32.totalorder %s3676_s24, %s3464_s13  ;;  %p3466_p1 = pneg %p3680_p13 }
  0x16   : > { %s3469_s21 = scalar_lea.hbm %s4582_s1, 2048  ;;  %p3470_p4 = scmp.lt.u32.totalorder %s3676_s24, %s4582_s1 }
  0x17   : > { %p3467_p2 = pnand %p3466_p1, %p3465_p0  ;;  %p3471_p5 = scmp.lt.u32.totalorder %s3469_s21, %s3464_s13 }
  0x18   : > { %p3473_p8 = scmp.lt.u32.totalorder %s3464_s13, %s3676_s24 }
  0x19   : > { %p3468_p3 = pneg %p3467_p2  ;;  %p3472_p7 = por %p3471_p5, %p3470_p4 }
  0x1b   : > { %p3474_p10 = por %p3473_p8, %p3472_p7 }
  0x1d   : > { %p3475_p9 = pnand %p3474_p10, %p3468_p3 }
  0x1f   : > { %3478 = shalt.err (!%p3475_p9)
}
  0x20   : > { %s3479_s19 = scalar_lea.vmem %s3684_s26, 1024  ;;  %s3562_s25 = smov [#allocation2]  }
  0x21   : > { %p3480_p0 = scmp.ne.s32.totalorder %s3684_s26, %s3479_s19  ;;  %s3484_s20 = sshll.u32 %s3562_s25, 4  ;;  %s3485_s20 = int_to_ptr.vmem [resolvable:$false] %s3484_s20 }
  0x22   : > { %s3486_s15 = scalar_lea.vmem %s3485_s20, 2048  ;;  %p3487_p11 = scmp.lt.s32.totalorder %s3684_s26, %s3485_s20 }
  0x23   : > { %p3482_p2 = pnand %p3480_p0, %p3466_p1  ;;  %p3488_p4 = scmp.lt.s32.totalorder %s3486_s15, %s3479_s19 }
  0x25   : > { %p3483_p12 = pneg %p3482_p2  ;;  %p3489_p5 = por %p3488_p4, %p3487_p11 }
  0x27   : > { %p3490_p7 = pnand %p3489_p5, %p3483_p12 }
  0x29   : > { %3493 = shalt.err (!%p3490_p7)
}
  0x2a   : > { %s3563_s13 = smov 128   ;;  %s3564_s21 = smov 8  }
  0x2b   : > { %3405 = dma.hbm_to_vmem [thread:$0]  (!%p3680_p13), %s3676_s24, 1024, %s3684_s26, %s3686_s12, %s3563_s13, %s3563_s13, %s3564_s21  }
  0x2c   : > { %p2430_p9 = scmp.ge.s32.totalorder %s3560_s30, 1  ;;  %p292_p1 = scmp.lt.s32.totalorder %s3560_s30, 3 }
  0x2e   : > { %p293_p3 = pnand %p2430_p9, %p292_p1 }
  0x30   : > { %296 = sbr.rel (%p293_p3) target bundleno = 925 (0x39d), region = 52 }
  0x37   : > { %s3717_s22 = sand.u32 1, %s3552_s28  }
  0x38   : > { %s2431_s23 = sshll.u32 %s3717_s22, 6  ;;  %s299_s19 = scalar_lea.sflag [#allocation3], %s3717_s22 }
  0x39   : > { %s3723_s25 = scalar_lea.vmem [#allocation2], %s2431_s23 }
  0x3a   : > { %3539 = dma.done.wait (%p3656_p6), %s299_s19, 1024  }
  0x3b   : > { %3541 = vsyncadd (%p3656_p6), %s299_s19, 4294966272  ;;  %s2433_s24 = sshll.u32 %s3634_s9, 3  ;;  %v498_v3 = vld [vmem:[%s4585_s4] sm:$0xff]  ;;  %v499_v5 = vld [vmem:[%s4585_s4 + $0x8] sm:$0xff]  ;;  %vm1482_vm0 = vcmask 261120   ;;  %s4515_s16 = scalar_lea.vmem [#allocation5], %s2431_s23 }
  0x3c   : > { %p341_p11 = scmp.lt.s32.totalorder %s2433_s24, 15  ;;  %v522_v6 = vand.u32 4294901760, %v498_v3  ;;  %v525_v7 = vand.u32 4294901760, %v499_v5  ;;  %v3763_v11 = vld [vmem:[%s4585_s4 + $0x10] sm:$0xff]  ;;  %v3768_v12 = vld [vmem:[%s4585_s4 + $0x18] sm:$0xff]  ;;  %v3801_v24 = vld [vmem:[%s4585_s4 + $0x20] sm:$0xff] }
  0x3d   : > { %v528_v14 = vand.u32 4294901760, %v3763_v11  ;;  %v531_v15 = vand.u32 4294901760, %v3768_v12  ;;  %v3806_v25 = vld [vmem:[%s4585_s4 + $0x28] sm:$0xff]  ;;  %v534_v29 = vand.u32 4294901760, %v3801_v24  ;;  %v3835_v38 = vld [vmem:[%s4585_s4 + $0x30] sm:$0xff]  ;;  %v3840_v39 = vld [vmem:[%s4585_s4 + $0x38] sm:$0xff] }
  0x3e   : > { %s4639_s24 = smov (!%p341_p11, %s2433_s24), 15  ;;  %v3753_v8 = vsub.f32 %v498_v3, %v522_v6  ;;  %v3758_v10 = vsub.f32 %v499_v5, %v525_v7  ;;  %v537_v31 = vand.u32 4294901760, %v3806_v25  ;;  %v540_v43 = vand.u32 4294901760, %v3835_v38  ;;  %v3873_v54 = vld [vmem:[%s4585_s4 + $0x40] sm:$0xff]  ;;  %v3878_v55 = vld [vmem:[%s4585_s4 + $0x48] sm:$0xff]  ;;  %s2339_s23 = sshll.u32 %s4515_s16, 4  ;;  %s4529_s23 = int_to_ptr.vmem [resolvable:$true] %s2339_s23 }
  0x3f   : > { %s2434_s26 = sshll.u32 %s4639_s24, 3  ;;  %v3786_v20 = vsub.f32 %v3763_v11, %v528_v14  ;;  %v3791_v21 = vsub.f32 %v3768_v12, %v531_v15  ;;  %v3822_v34 = vsub.f32 %v3801_v24, %v534_v29  ;;  %v543_v47 = vand.u32 4294901760, %v3840_v39  ;;  %v512_v24 = vld [vmem:[%s4585_s4 + $0x70] sm:$0xff]  ;;  %s2445_s15 = sshll.u32 %s3634_s9, 10 }
  0x40   : > { %s3733_s20 = scalar_lea.vmem %s4581_s0, %s2434_s26  ;;  %v4606_v13 = vand.u32 4294901760, %v3753_v8  ;;  %v4605_v17 = vand.u32 4294901760, %v3758_v10  ;;  %v3830_v37 = vsub.f32 %v3806_v25, %v537_v31  ;;  %v3852_v48 = vpack.c.bf16 %v525_v7, %v522_v6  ;;  %v3911_v7 = vld [vmem:[%s4585_s4 + $0x50] sm:$0xff]  ;;  %v513_v25 = vld [vmem:[%s4585_s4 + $0x78] sm:$0xff]  ;;  %s4535_s19 = scalar_lea.hbm %s4589_s8, %s2445_s15 }
  0x41   : > { %v3736_v0 = vld [vmem:[%s3733_s20] sm:$0xff]  ;;  %v3739_v1 = vld [vmem:[%s3733_s20 + $0x8] sm:$0xff]  ;;  %v3756_v9 = vld [vmem:[%s3733_s20 + $0x10] sm:$0xff]  ;;  %v4604_v27 = vand.u32 4294901760, %v3786_v20  ;;  %v4603_v28 = vand.u32 4294901760, %v3791_v21  ;;  %v4602_v42 = vand.u32 4294901760, %v3822_v34  ;;  %v3863_v52 = vsub.f32 %v3835_v38, %v540_v43 }
  0x42   : > { %356 = vadd.xlane.f32.xlu0 %v3736_v0  ;;  %v380_v2 = vmul.f32 %v3736_v0, %v3736_v0  ;;  %v381_v4 = vmul.f32 %v3739_v1, %v3739_v1  ;;  %v3774_v16 = vld [vmem:[%s3733_s20 + $0x18] sm:$0xff]  ;;  %v382_v18 = vmul.f32 %v3756_v9, %v3756_v9  ;;  %v686_v19 = vsub.f32 %v3753_v8, %v4606_v13  ;;  %v3825_v35 = vld [vmem:[%s3733_s20 + $0x20] sm:$0xff]  ;;  %v3845_v44 = vld [vmem:[%s3733_s20 + $0x28] sm:$0xff]  ;;  %s2326_s9 = scalar_lea.sflag [#allocation4], %s3717_s22  ;;  %s3494_s24 = scalar_lea.vmem %s4529_s23, 1024 }
  0x43   : > { %v383_v22 = vmul.f32 %v3774_v16, %v3774_v16  ;;  %v693_v23 = vsub.f32 %v3758_v10, %v4605_v17  ;;  %v700_v32 = vsub.f32 %v3786_v20, %v4604_v27  ;;  %v707_v33 = vsub.f32 %v3791_v21, %v4603_v28  ;;  %3047 = vmatprep.subr.bf16.mxu1 %v3852_v48  ;;  %v3899_v3 = vld [vmem:[%s3733_s20 + $0x30] sm:$0xff]  ;;  %p3495_p6 = scmp.ne.s32.totalorder %s4529_s23, %s3494_s24  ;;  %p4631_p12 = scmp.ne.s32.totalorder %s4610_s17, 0 }
  0x44   : > { %388 = vadd.xlane.f32.xlu1 %v380_v2  ;;  %v687_v26 = vand.u32 4294901760, %v686_v19  ;;  %v384_v45 = vmul.f32 %v3825_v35, %v3825_v35  ;;  %v4601_v46 = vand.u32 4294901760, %v3830_v37  ;;  %v714_v50 = vsub.f32 %v3822_v34, %v4602_v42  ;;  %3049 = vmatpush3.bf16.msra.mxu1 %v3852_v48 }
  0x45   : > { %v694_v30 = vand.u32 4294901760, %v693_v23  ;;  %v701_v40 = vand.u32 4294901760, %v700_v32  ;;  %v708_v41 = vand.u32 4294901760, %v707_v33  ;;  %v3868_v53 = vsub.f32 %v3840_v39, %v543_v47  ;;  %p3496_p13 = pnand %p3495_p6, %p4631_p12 }
  0x46   : > { %358 = vadd.xlane.f32.xlu0 %v3739_v1  ;;  %v721_v51 = vsub.f32 %v3830_v37, %v4601_v46  ;;  %v385_v56 = vmul.f32 %v3845_v44, %v3845_v44  ;;  %v715_v57 = vand.u32 4294901760, %v714_v50  ;;  %v546_v58 = vand.u32 4294901760, %v3873_v54 }
  0x47   : > { %v3078_v36 = vpack.c.bf16 %v694_v30, %v687_v26  ;;  %v3082_v49 = vpack.c.bf16 %v708_v41, %v701_v40  ;;  %v549_v59 = vand.u32 4294901760, %v3878_v55  ;;  %v4600_v61 = vand.u32 4294901760, %v3863_v52  ;;  %v3923_v30 = vld [vmem:[%s3733_s20 + $0x38] sm:$0xff]  ;;  %p3497_p8 = pneg %p3496_p13 }
  0x48   : > { %390 = vadd.xlane.f32.xlu1 %v381_v4  ;;  %v722_v60 = vand.u32 4294901760, %v721_v51  ;;  %v4599_v62 = vand.u32 4294901760, %v3868_v53  ;;  %v3891_v63 = vsub.f32 %v3873_v54, %v546_v58  ;;  %v552_v23 = vand.u32 4294901760, %v3911_v7 }
  0x49   : > { %3079 = vmatprep.subr.bf16.mxu0 %v3078_v36  ;;  %v3896_v2 = vsub.f32 %v3878_v55, %v549_v59  ;;  %v728_v5 = vsub.f32 %v3863_v52, %v4600_v61  ;;  %v386_v32 = vmul.f32 %v3899_v3, %v3899_v3  ;;  %v3932_v40 = vpack.c.bf16 %v531_v15, %v528_v14  ;;  %v3955_v14 = vld [vmem:[%s4585_s4 + $0x60] sm:$0xff]  ;;  %v511_v15 = vld [vmem:[%s4585_s4 + $0x68] sm:$0xff] }
  0x4a   : > { %360 = vadd.xlane.f32.xlu0 %v3756_v9  ;;  %3081 = vmatpush3.bf16.msra.mxu0 %v3078_v36  ;;  %v3086_v4 = vpack.c.bf16 %v722_v60, %v715_v57  ;;  %v735_v6 = vsub.f32 %v3868_v53, %v4599_v62  ;;  %v4598_v19 = vand.u32 4294901760, %v3891_v63  ;;  %v3945_v11 = vsub.f32 %v3911_v7, %v552_v23 }
  0x4b   : > { %3083 = vmatprep.subr.bf16.mxu0 %v3082_v49  ;;  %v729_v33 = vand.u32 4294901760, %v728_v5  ;;  %3051 = vmatprep.subr.bf16.mxu1 %v3932_v40  ;;  %v558_v57 = vand.u32 4294901760, %v3955_v14  ;;  %v561_v60 = vand.u32 4294901760, %v511_v15 }
  0x4c   : > { %362 = vadd.xlane.f32.xlu1 %v3774_v16  ;;  %v736_v36 = vand.u32 4294901760, %v735_v6  ;;  %v742_v41 = vsub.f32 %v3891_v63, %v4598_v19  ;;  %3053 = vmatpush3.bf16.msra.mxu1 %v3932_v40  ;;  %v3970_v6 = vpack.c.bf16 %v537_v31, %v534_v29  ;;  %v564_v31 = vand.u32 4294901760, %v512_v24 }
  0x4e   : > { %392 = vadd.xlane.f32.xlu0 %v382_v18  ;;  %3085 = vmatpush3.bf16.msra.mxu0 %v3082_v49  ;;  %v3916_v18 = vld [vmem:[%s4585_s4 + $0x58] sm:$0xff]  ;;  %v387_v49 = vmul.f32 %v3923_v30, %v3923_v30  ;;  %v3090_v50 = vpack.c.bf16 %v736_v36, %v729_v33  ;;  %v743_v51 = vand.u32 4294901760, %v742_v41  ;;  %v3973_v36 = vsub.f32 %v3955_v14, %v558_v57 }
  0x4f   : > { %v555_v26 = vand.u32 4294901760, %v3916_v18  ;;  %3087 = vmatprep.subr.bf16.mxu0 %v3086_v4  ;;  %3055 = vmatprep.subr.bf16.mxu1 %v3970_v6 }
  0x50   : > { %394 = vadd.xlane.f32.xlu1 %v383_v22  ;;  %v4593_v22 = vand.u32 4294901760, %v3896_v2  ;;  %v4597_v29 = vand.u32 4294901760, %v3973_v36  ;;  %3057 = vmatpush3.bf16.msra.mxu1 %v3970_v6 }
  0x51   : > { %v3950_v12 = vsub.f32 %v3916_v18, %v555_v26  ;;  %v4031_v54 = vpack.c.bf16 %v555_v26, %v552_v23  ;;  %v4048_v18 = vpack.c.bf16 %v3791_v21, %v3786_v20  ;;  %v4059_v23 = vpack.c.bf16 %v3868_v53, %v3863_v52 }
  0x52   : > { %364 = vadd.xlane.f32.xlu0 %v3825_v35  ;;  %3089 = vmatpush3.bf16.msra.mxu0 %v3086_v4  ;;  %v4592_v4 = vand.u32 4294901760, %v3945_v11  ;;  %v4063_v26 = vpack.c.bf16 %v3896_v2, %v3891_v63 }
  0x53   : > { %3091 = vmatprep.subr.bf16.mxu0 %v3090_v50  ;;  %v4591_v5 = vand.u32 4294901760, %v3950_v12 }
  0x54   : > { %366 = vadd.xlane.f32.xlu1 %v3845_v44  ;;  %v756_v41 = vsub.f32 %v3945_v11, %v4592_v4 }
  0x56   : > { %396 = vadd.xlane.f32.xlu0 %v384_v45  ;;  %v749_v45 = vsub.f32 %v3896_v2, %v4593_v22  ;;  %3093 = vmatpush3.bf16.msra.mxu0 %v3090_v50  ;;  %v567_v50 = vand.u32 4294901760, %v513_v25  ;;  %v757_v14 = vand.u32 4294901760, %v756_v41 }
  0x58   : > { %398 = vadd.xlane.f32.xlu1 %v385_v56  ;;  %v750_v56 = vand.u32 4294901760, %v749_v45  ;;  %v763_v45 = vsub.f32 %v3950_v12, %v4591_v5  ;;  %v4002_v5 = vsub.f32 %v512_v24, %v564_v31  ;;  %v4004_v4 = vsub.f32 %v513_v25, %v567_v50 }
  0x59   : > { %v4044_v7 = vpack.c.bf16 %v567_v50, %v564_v31 }
  0x5a   : > { %368 = vadd.xlane.f32.xlu0 %v3899_v3  ;;  %v3094_v33 = vpack.c.bf16 %v750_v56, %v743_v51  ;;  %v3997_v56 = vpack.c.bf16 %v543_v47, %v540_v43  ;;  %4613 = vst [vmem:[#allocation8_spill] sm:$0xff] %v4004_v4  ;;  %v4595_v39 = vand.u32 4294901760, %v4002_v5  ;;  %v4594_v43 = vand.u32 4294901760, %v4004_v4 }
  0x5b   : > { %v4075_v31 = vpack.c.bf16 %v4004_v4, %v4002_v5 }
  0x5c   : > { %370 = vadd.xlane.f32.xlu1 %v3923_v30  ;;  %3095 = vmatprep.subr.bf16.mxu0 %v3094_v33  ;;  %v791_v24 = vsub.f32 %v4004_v4, %v4594_v43 }
  0x5d   : > { %3097 = vmatpush3.bf16.msra.mxu0 %v3094_v33  ;;  %3059 = vmatprep.subr.bf16.mxu1 %v3997_v56  ;;  %v4017_v33 = vpack.c.bf16 %v549_v59, %v546_v58  ;;  %v4035_v58 = vpack.c.bf16 %v561_v60, %v558_v57  ;;  %v4039_v59 = vpack.c.bf16 %v3758_v10, %v3753_v8 }
  0x5e   : > { %400 = vadd.xlane.f32.xlu0 %v386_v32  ;;  %v3981_v32 = vsub.f32 %v511_v15, %v561_v60  ;;  %v764_v15 = vand.u32 4294901760, %v763_v45  ;;  %3061 = vmatpush3.bf16.msra.mxu1 %v3997_v56  ;;  %v784_v45 = vsub.f32 %v4002_v5, %v4595_v39  ;;  %v4067_v57 = vpack.c.bf16 %v3950_v12, %v3945_v11 }
  0x5f   : > { %3063 = vmatprep.subr.bf16.mxu1 %v4017_v33 }
  0x60   : > { %402 = vadd.xlane.f32.xlu1 %v387_v49  ;;  %v4596_v51 = vand.u32 4294901760, %v3981_v32  ;;  %v770_v49 = vsub.f32 %v3973_v36, %v4597_v29  ;;  %v3098_v22 = vpack.c.bf16 %v764_v15, %v757_v14  ;;  %v785_v14 = vand.u32 4294901760, %v784_v45 }
  0x61   : > { %v792_v15 = vand.u32 4294901760, %v791_v24  ;;  %v4071_v60 = vpack.c.bf16 %v3981_v32, %v3973_v36 }
  0x62   : > { %v777_v41 = vsub.f32 %v3981_v32, %v4596_v51  ;;  %v771_v38 = vand.u32 4294901760, %v770_v49  ;;  %3099 = vmatprep.subr.bf16.mxu0 %v3098_v22  ;;  %3065 = vmatpush3.bf16.msra.mxu1 %v4017_v33 }
  0x63   : > { %3101 = vmatpush3.bf16.msra.mxu0 %v3098_v22  ;;  %v3106_v55 = vpack.c.bf16 %v792_v15, %v785_v14  ;;  %3067 = vmatprep.subr.bf16.mxu1 %v4031_v54  ;;  %v4055_v22 = vpack.c.bf16 %v3830_v37, %v3822_v34 }
  0x64   : > { %v778_v47 = vand.u32 4294901760, %v777_v41 }
  0x66   : > { %v3102_v25 = vpack.c.bf16 %v778_v47, %v771_v38  ;;  %3069 = vmatpush3.bf16.msra.mxu1 %v4031_v54 }
  0x67   : > { %3071 = vmatprep.subr.bf16.mxu1 %v4035_v58 }
  0x68   : > { %3103 = vmatprep.subr.bf16.mxu0 %v3102_v25 }
  0x69   : > { %3105 = vmatpush3.bf16.msra.mxu0 %v3102_v25 }
  0x6a   : > { %3107 = vmatprep.subr.bf16.mxu0 %v3106_v55  ;;  %3073 = vmatpush3.bf16.msra.mxu1 %v4035_v58 }
  0x6b   : > { %3075 = vmatprep.subr.bf16.mxu1 %v4044_v7 }
  0x6d   : > { %3109 = vmatpush3.bf16.msra.mxu0 %v3106_v55 }
  0x6e   : > { %3111 = vmatprep.subr.bf16.mxu0 %v4039_v59  ;;  %3077 = vmatpush3.bf16.msra.mxu1 %v4044_v7 }
  0x6f   : > { %3286 = vmatprep.subr.bf16.mxu1 %v3852_v48 }
  0xcf   : > { %v357_v50 = vpop.xlane.xlu0 %356 }
  0xd0   : > { %v372_v49 = vmul.f32 0.0078125, %v357_v50 }
  0xd1   : > { %v389_v41 = vpop.xlane.xlu1 %388 }
  0xd2   : > { %v412_v38 = vmul.f32 %v372_v49, %v372_v49  ;;  %v404_v47 = vmul.f32 0.0078125, %v389_v41 }
  0xd3   : > { %v359_v45 = vpop.xlane.xlu0 %358 }
  0xd4   : > { %v420_v24 = vsub.f32 %v404_v47, %v412_v38  ;;  %v373_v25 = vmul.f32 0.0078125, %v359_v45 }
  0xd5   : > { %v391_v14 = vpop.xlane.xlu1 %390 }
  0xd6   : > { %v428_v15 = vmax.f32 %v420_v24, 0.0  ;;  %v413_v55 = vmul.f32 %v373_v25, %v373_v25  ;;  %v405_v43 = vmul.f32 0.0078125, %v391_v14 }
  0xd7   : > { %v361_v39 = vpop.xlane.xlu0 %360 }
  0xd8   : > { %v444_v51 = vadd.f32 1e-05, %v428_v15  ;;  %v421_v29 = vsub.f32 %v405_v43, %v413_v55  ;;  %v4077_v19 = vmul.f32 0.0078125, %v361_v39 }
  0xd9   : > { %v363_v62 = vpop.xlane.xlu1 %362 }
  0xda   : > { %3448 = vrsqrt.f32 %v444_v51  ;;  %v429_v61 = vmax.f32 %v421_v29, 0.0  ;;  %v414_v50 = vmul.f32 %v4077_v19, %v4077_v19  ;;  %v4081_v46 = vmul.f32 0.0078125, %v363_v62 }
  0xdb   : > { %v393_v41 = vpop.xlane.xlu0 %392 }
  0xdc   : > { %v445_v38 = vadd.f32 1e-05, %v429_v61  ;;  %v406_v47 = vmul.f32 0.0078125, %v393_v41  ;;  %v415_v45 = vmul.f32 %v4081_v46, %v4081_v46  ;;  %v436_v61 = vsub.f32 %v3736_v0, %v372_v49  ;;  %v4102_v49 = vld [vmem:[%s4584_s3] ss:$0 sm:$0xff] }
  0xdd   : > { %v395_v24 = vpop.xlane.xlu1 %394 }
  0xde   : > { %3450 = vrsqrt.f32 %v445_v38  ;;  %v422_v14 = vsub.f32 %v406_v47, %v414_v50  ;;  %v407_v43 = vmul.f32 0.0078125, %v395_v24  ;;  %v4095_v47 = vld [vmem:[%s4583_s2] ss:$0 sm:$0xff] }
  0xdf   : > { %v365_v39 = vpop.xlane.xlu0 %364 }
  0xe0   : > { %v430_v15 = vmax.f32 %v422_v14, 0.0  ;;  %v423_v55 = vsub.f32 %v407_v43, %v415_v45  ;;  %v4085_v51 = vmul.f32 0.0078125, %v365_v39 }
  0xe1   : > { %v367_v29 = vpop.xlane.xlu1 %366 }
  0xe2   : > { %v446_v42 = vadd.f32 1e-05, %v430_v15  ;;  %v431_v28 = vmax.f32 %v423_v55, 0.0  ;;  %v416_v62 = vmul.f32 %v4085_v51, %v4085_v51  ;;  %v4090_v41 = vmul.f32 0.0078125, %v367_v29 }
  0xe3   : > { %v397_v27 = vpop.xlane.xlu0 %396 }
  0xe4   : > { %v3449_v17 = vpop.eup %3448  ;;  %3452 = vrsqrt.f32 %v446_v42  ;;  %v447_v50 = vadd.f32 1e-05, %v431_v28  ;;  %v408_v38 = vmul.f32 0.0078125, %v397_v27  ;;  %v417_v45 = vmul.f32 %v4090_v41, %v4090_v41 }
  0xe5   : > { %v399_v24 = vpop.xlane.xlu1 %398  ;;  %v460_v14 = vmul.f32 %v3449_v17, %v436_v61  ;;  %v437_v27 = vsub.f32 %v3739_v1, %v373_v25 }
  0xe6   : > { %3454 = vrsqrt.f32 %v447_v50  ;;  %v424_v43 = vsub.f32 %v408_v38, %v416_v62  ;;  %v409_v0 = vmul.f32 0.0078125, %v399_v24 }
  0xe7   : > { %v369_v28 = vpop.xlane.xlu0 %368  ;;  %v475_v42 = vmul.f32 %v4095_v47, %v460_v14 }
  0xe8   : > { %v3451_v39 = vpop.eup %3450  ;;  %v432_v15 = vmax.f32 %v424_v43, 0.0  ;;  %v425_v55 = vsub.f32 %v409_v0, %v417_v45  ;;  %v4106_v29 = vmul.f32 0.0078125, %v369_v28  ;;  %v438_v0 = vsub.f32 %v3756_v9, %v4077_v19 }
  0xe9   : > { %v371_v13 = vpop.xlane.xlu1 %370  ;;  %v490_v17 = vadd.f32 %v4102_v49, %v475_v42  ;;  %v461_v62 = vmul.f32 %v3451_v39, %v437_v27 }
  0xea   : > { %v448_v61 = vadd.f32 1e-05, %v432_v15  ;;  %v433_v50 = vmax.f32 %v425_v55, 0.0  ;;  %v418_v38 = vmul.f32 %v4106_v29, %v4106_v29  ;;  %v4111_v24 = vmul.f32 0.0078125, %v371_v13 }
  0xeb   : > { %v401_v1 = vpop.xlane.xlu0 %400  ;;  %v4113_v25 = vand.u32 4294901760, %v490_v17  ;;  %v476_v14 = vmul.f32 %v4095_v47, %v461_v62  ;;  %v439_v62 = vsub.f32 %v3774_v16, %v4081_v46 }
  0xec   : > { %3456 = vrsqrt.f32 %v448_v61  ;;  %v449_v45 = vadd.f32 1e-05, %v433_v50  ;;  %v410_v43 = vmul.f32 0.0078125, %v401_v1  ;;  %v419_v27 = vmul.f32 %v4111_v24, %v4111_v24 }
  0xed   : > { %2738 = vmatprep.mubr.f32.mxu0 %v4113_v25  ;;  %v403_v28 = vpop.xlane.xlu1 %402  ;;  %v491_v13 = vadd.f32 %v4102_v49, %v476_v14  ;;  %v4123_v42 = vsub.f32 %v490_v17, %v4113_v25 }
  0xee   : > { %v3453_v39 = vpop.eup %3452  ;;  %3458 = vrsqrt.f32 %v449_v45  ;;  %v426_v15 = vsub.f32 %v410_v43, %v418_v38  ;;  %v411_v55 = vmul.f32 0.0078125, %v403_v28 }
  0xef   : > { %v4127_v61 = vand.u32 4294901760, %v491_v13  ;;  %v604_v9 = vand.u32 4294901760, %v4123_v42  ;;  %v462_v19 = vmul.f32 %v3453_v39, %v438_v0 }
  0xf0   : > { %v3455_v50 = vpop.eup %3454  ;;  %v434_v1 = vmax.f32 %v426_v15, 0.0  ;;  %v427_v4 = vsub.f32 %v411_v55, %v419_v27 }
  0xf1   : > { %2739 = vmatmul.mubr.f32.vlgmr.msra.gmra.mrb[0].mxu0 %v4127_v61  ;;  %v605_v17 = vsub.f32 %v4123_v42, %v604_v9  ;;  %v477_v38 = vmul.f32 %v4095_v47, %v462_v19  ;;  %v4136_v14 = vsub.f32 %v491_v13, %v4127_v61  ;;  %v463_v16 = vmul.f32 %v3455_v50, %v439_v62 }
  0xf2   : > { %v450_v46 = vadd.f32 1e-05, %v434_v1  ;;  %v435_v45 = vmax.f32 %v427_v4, 0.0  ;;  %3113 = vmatpush3.bf16.msra.mxu0 %v4039_v59  ;;  %v440_v13 = vsub.f32 %v3825_v35, %v4085_v51  ;;  %v441_v62 = vsub.f32 %v3845_v44, %v4090_v41 }
  0xf3   : > { %3115 = vmatprep.subr.bf16.mxu0 %v4048_v18  ;;  %v606_v43 = vand.u32 4294901760, %v605_v17  ;;  %v492_v0 = vadd.f32 %v4102_v49, %v477_v38  ;;  %v614_v27 = vand.u32 4294901760, %v4136_v14  ;;  %v478_v28 = vmul.f32 %v4095_v47, %v463_v16 }
  0xf4   : > { %3460 = vrsqrt.f32 %v450_v46  ;;  %v451_v39 = vadd.f32 1e-05, %v435_v45 }
  0xf5   : > { %2694 = vmatprep.mubr.f32.mxu1 %v606_v43  ;;  %v4145_v15 = vand.u32 4294901760, %v492_v0  ;;  %v615_v4 = vsub.f32 %v4136_v14, %v614_v27  ;;  %v493_v59 = vadd.f32 %v4102_v49, %v478_v28  ;;  %v442_v43 = vsub.f32 %v3899_v3, %v4106_v29 }
  0xf6   : > { %v3457_v55 = vpop.eup %3456  ;;  %3462 = vrsqrt.f32 %v451_v39  ;;  %3117 = vmatpush3.bf16.msra.mxu0 %v4048_v18 }
  0xf7   : > { %2741 = vmatprep.mubr.f32.mxu0 %v4145_v15  ;;  %3119 = vmatprep.subr.bf16.mxu0 %v4055_v22  ;;  %v616_v35 = vand.u32 4294901760, %v615_v4  ;;  %v4156_v51 = vand.u32 4294901760, %v493_v59  ;;  %v4159_v19 = vsub.f32 %v492_v0, %v4145_v15  ;;  %v464_v50 = vmul.f32 %v3457_v55, %v440_v13 }
  0xf8   : > { %v3459_v1 = vpop.eup %3458  ;;  %v443_v4 = vsub.f32 %v3923_v30, %v4111_v24 }
  0xf9   : > { %2695 = vmatmul.mubr.f32.vlgmr.msra.gmra.mrb[0].mxu1 %v616_v35  ;;  %2742 = vmatmul.mubr.f32.gmra.mrb[2].mxu0 %v4156_v51  ;;  %v624_v44 = vand.u32 4294901760, %v4159_v19  ;;  %v479_v41 = vmul.f32 %v4095_v47, %v464_v50  ;;  %v4165_v18 = vsub.f32 %v493_v59, %v4156_v51  ;;  %v465_v17 = vmul.f32 %v3459_v1, %v441_v62 }
  0xfa   : > { %3121 = vmatpush3.bf16.msra.mxu0 %v4055_v22  ;;  %3294 = vmatpush3.bf16.msra.mxu1 %v3852_v48 }
  0xfb   : > { %3123 = vmatprep.subr.bf16.mxu0 %v4059_v23  ;;  %3287 = vmatprep.subr.bf16.mxu1 %v3932_v40  ;;  %v625_v38 = vsub.f32 %v4159_v19, %v624_v44  ;;  %v494_v16 = vadd.f32 %v4102_v49, %v479_v41  ;;  %v634_v46 = vand.u32 4294901760, %v4165_v18  ;;  %v480_v45 = vmul.f32 %v4095_v47, %v465_v17 }
  0xfd   : > { %v626_v22 = vand.u32 4294901760, %v625_v38  ;;  %v4179_v0 = vand.u32 4294901760, %v494_v16  ;;  %v635_v28 = vsub.f32 %v4165_v18, %v634_v46  ;;  %v495_v39 = vadd.f32 %v4102_v49, %v480_v45 }
  0xfe   : > { %v3461_v13 = vpop.eup %3460  ;;  %3125 = vmatpush3.bf16.msra.mxu0 %v4059_v23  ;;  %3295 = vmatpush3.bf16.msra.mxu1 %v3932_v40 }
  0xff   : > { %2697 = vmatprep.mubr.f32.mxu1 %v626_v22  ;;  %2744 = vmatprep.mubr.f32.mxu0 %v4179_v0  ;;  %v636_v3 = vand.u32 4294901760, %v635_v28  ;;  %v4190_v29 = vand.u32 4294901760, %v495_v39  ;;  %v4193_v59 = vsub.f32 %v494_v16, %v4179_v0  ;;  %v466_v55 = vmul.f32 %v3461_v13, %v442_v43 }
 0x100   : > { %v3463_v62 = vpop.eup %3462  ;;  %3127 = vmatprep.subr.bf16.mxu0 %v4063_v26  ;;  %3288 = vmatprep.subr.bf16.mxu1 %v3970_v6 }
 0x101   : > { %2698 = vmatmul.mubr.f32.gmra.mrb[2].mxu1 %v636_v3  ;;  %2745 = vmatmul.mubr.f32.gmra.mrb[4].mxu0 %v4190_v29  ;;  %v644_v30 = vand.u32 4294901760, %v4193_v59  ;;  %v481_v23 = vmul.f32 %v4095_v47, %v466_v55  ;;  %v4201_v24 = vsub.f32 %v495_v39, %v4190_v29  ;;  %v467_v35 = vmul.f32 %v3463_v62, %v443_v4 }
 0x102   : > { %3129 = vmatpush3.bf16.msra.mxu0 %v4063_v26  ;;  %3296 = vmatpush3.bf16.msra.mxu1 %v3970_v6  ;;  %v4616_v3 = vand.u32 4294901760, %v3786_v20  ;;  %v4617_v55 = vand.u32 4294901760, %v3791_v21  ;;  %v4620_v20 = vand.u32 4294901760, %v3863_v52  ;;  %v4621_v21 = vand.u32 4294901760, %v3868_v53 }
 0x103   : > { %3131 = vmatprep.subr.bf16.mxu0 %v4067_v57  ;;  %3289 = vmatprep.subr.bf16.mxu1 %v3997_v56  ;;  %v645_v50 = vsub.f32 %v4193_v59, %v644_v30  ;;  %v496_v1 = vadd.f32 %v4102_v49, %v481_v23  ;;  %v654_v41 = vand.u32 4294901760, %v4201_v24  ;;  %v482_v17 = vmul.f32 %v4095_v47, %v467_v35 }
 0x104   : > { %v3178_v62 = vpack.c.bf16 %v4617_v55, %v4616_v3  ;;  %v4624_v52 = vand.u32 4294901760, %v3945_v11  ;;  %v4625_v53 = vand.u32 4294901760, %v3950_v12 }
 0x105   : > { %v646_v38 = vand.u32 4294901760, %v645_v50  ;;  %v4213_v16 = vand.u32 4294901760, %v496_v1  ;;  %v655_v26 = vsub.f32 %v4201_v24, %v654_v41  ;;  %v497_v45 = vadd.f32 %v4102_v49, %v482_v17 }
 0x106   : > { %3133 = vmatpush3.bf16.msra.mxu0 %v4067_v57  ;;  %3297 = vmatpush3.bf16.msra.mxu1 %v3997_v56 }
 0x107   : > { %2700 = vmatprep.mubr.f32.mxu1 %v646_v38  ;;  %2747 = vmatprep.mubr.f32.mxu0 %v4213_v16  ;;  %v656_v43 = vand.u32 4294901760, %v655_v26  ;;  %v4222_v22 = vand.u32 4294901760, %v497_v45  ;;  %v4225_v47 = vsub.f32 %v496_v1, %v4213_v16 }
 0x108   : > { %3135 = vmatprep.subr.bf16.mxu0 %v4071_v60  ;;  %3290 = vmatprep.subr.bf16.mxu1 %v4017_v33 }
 0x109   : > { %2701 = vmatmul.mubr.f32.gmra.mrb[4].mxu1 %v656_v43  ;;  %2748 = vmatmul.mubr.f32.gmra.mrb[6].mxu0 %v4222_v22  ;;  %v664_v57 = vand.u32 4294901760, %v4225_v47  ;;  %v4232_v49 = vsub.f32 %v497_v45, %v4222_v22 }
 0x10a   : > { %3137 = vmatpush3.bf16.msra.mxu0 %v4071_v60  ;;  %3298 = vmatpush3.bf16.msra.mxu1 %v4017_v33 }
 0x10b   : > { %2782 = vmatprep.mubr.f32.mxu0 %v4123_v42  ;;  %3139 = vmatprep.subr.bf16.mxu0 %v4075_v31  ;;  %v665_v28 = vsub.f32 %v4225_v47, %v664_v57  ;;  %v674_v39 = vand.u32 4294901760, %v4232_v49  ;;  %v4615_v42 = vand.u32 4294901760, %v3758_v10  ;;  %v4619_v10 = vand.u32 4294901760, %v3830_v37 }
 0x10c   : > { %3291 = vmatprep.subr.bf16.mxu1 %v4031_v54  ;;  %v4623_v37 = vand.u32 4294901760, %v3896_v2  ;;  %v4628_v2 = vand.u32 4294901760, %v4002_v5 }
 0x10d   : > { %v666_v13 = vand.u32 4294901760, %v665_v28  ;;  %v675_v4 = vsub.f32 %v4232_v49, %v674_v39 }
 0x10e   : > { %3141 = vmatpush3.bf16.msra.mxu0 %v4075_v31  ;;  %3299 = vmatpush3.bf16.msra.mxu1 %v4031_v54  ;;  %v4614_v31 = vand.u32 4294901760, %v3753_v8  ;;  %v4618_v8 = vand.u32 4294901760, %v3822_v34  ;;  %v4622_v34 = vand.u32 4294901760, %v3891_v63 }
 0x10f   : > { %2703 = vmatprep.mubr.f32.mxu1 %v666_v13  ;;  %3143 = vmatprep.subr.bf16.mxu0 %v3852_v48  ;;  %v676_v60 = vand.u32 4294901760, %v675_v4 }
 0x110   : > { %3292 = vmatprep.subr.bf16.mxu1 %v4035_v58  ;;  %v3182_v23 = vpack.c.bf16 %v4619_v10, %v4618_v8 }
 0x111   : > { %2783 = vmatmul.mubr.f32.vlgmr.msra.gmra.mrb[0].mxu0 %v4136_v14  ;;  %2704 = vmatmul.mubr.f32.gmra.mrb[6].mxu1 %v676_v60  ;;  %v3186_v14 = vpack.c.bf16 %v4621_v21, %v4620_v20 }
 0x112   : > { %2785 = vmatprep.mubr.f32.mxu0 %v4159_v19  ;;  %3145 = vmatpush3.bf16.msra.mxu0 %v3852_v48  ;;  %v3194_v19 = vpack.c.bf16 %v4625_v53, %v4624_v52 }
 0x113   : > { %3300 = vmatpush3.bf16.msra.mxu1 %v4035_v58  ;;  %2920 = vmatprep.mubr.f32.mxu1 %v4179_v0 }
 0x114   : > { %3147 = vmatprep.subr.bf16.mxu0 %v3932_v40  ;;  %3293 = vmatprep.subr.bf16.mxu1 %v4044_v7 }
 0x115   : > { %2786 = vmatmul.mubr.f32.gmra.mrb[2].mxu0 %v4165_v18  ;;  %v4627_v18 = vand.u32 4294901760, %v3981_v32  ;;  %v1473_v32 = vld [vmem:[%s4587_s6 + $0x10] sm:$0xff] }
 0x116   : > { %2788 = vmatprep.mubr.f32.mxu0 %v4193_v59  ;;  %3149 = vmatpush3.bf16.msra.mxu0 %v3932_v40 }
 0x117   : > { %3301 = vmatpush3.bf16.msra.mxu1 %v4044_v7  ;;  %3151 = vmatprep.subr.bf16.mxu0 %v3970_v6 }
 0x119   : > { %2789 = vmatmul.mubr.f32.gmra.mrb[4].mxu0 %v4201_v24 }
 0x11a   : > { %2921 = vmatmul.mubr.f32.vlgmr.msra.gmra.mrb[8].mxu1 %v4190_v29  ;;  %2791 = vmatprep.mubr.f32.mxu0 %v4225_v47 }
 0x11b   : > { %3153 = vmatpush3.bf16.msra.mxu0 %v3970_v6  ;;  %2923 = vmatprep.mubr.f32.mxu1 %v4213_v16 }
 0x11c   : > { %3155 = vmatprep.subr.bf16.mxu0 %v3997_v56 }
 0x11d   : > { %2792 = vmatmul.mubr.f32.gmra.mrb[6].mxu0 %v4232_v49 }
 0x11e   : > { %2924 = vmatmul.mubr.f32.gmra.mrb[10].mxu1 %v4222_v22  ;;  %2826 = vmatprep.mubr.f32.mxu0 %v604_v9  ;;  %v3174_v9 = vpack.c.bf16 %v4615_v42, %v4614_v31 }
 0x11f   : > { %3157 = vmatpush3.bf16.msra.mxu0 %v3997_v56 }
 0x120   : > { %3159 = vmatprep.subr.bf16.mxu0 %v4017_v33 }
 0x123   : > { %3161 = vmatpush3.bf16.msra.mxu0 %v4017_v33 }
 0x124   : > { %3163 = vmatprep.subr.bf16.mxu0 %v4031_v54 }
 0x127   : > { %3165 = vmatpush3.bf16.msra.mxu0 %v4031_v54 }
 0x128   : > { %3167 = vmatprep.subr.bf16.mxu0 %v4035_v58 }
 0x12b   : > { %3169 = vmatpush3.bf16.msra.mxu0 %v4035_v58 }
 0x12c   : > { %3171 = vmatprep.subr.bf16.mxu0 %v4044_v7 }
 0x12f   : > { %3173 = vmatpush3.bf16.msra.mxu0 %v4044_v7 }
 0x130   : > { %3175 = vmatprep.subr.bf16.mxu0 %v3174_v9 }
 0x132   : > { %2827 = vmatmul.mubr.f32.vlgmr.msra.gmra.mrb[0].mxu0 %v614_v27  ;;  %v3190_v27 = vpack.c.bf16 %v4623_v37, %v4622_v34 }
 0x133   : > { %2829 = vmatprep.mubr.f32.mxu0 %v624_v44  ;;  %3177 = vmatpush3.bf16.msra.mxu0 %v3174_v9  ;;  %v4626_v44 = vand.u32 4294901760, %v3973_v36 }
 0x134   : > { %3179 = vmatprep.subr.bf16.mxu0 %v3178_v62 }
 0x135   : > { %v3198_v63 = vpack.c.bf16 %v4627_v18, %v4626_v44 }
 0x136   : > { %2830 = vmatmul.mubr.f32.gmra.mrb[2].mxu0 %v634_v46  ;;  %v4629_v46 = vld [vmem:[#allocation8_spill] sm:$0xff] }
 0x137   : > { %2832 = vmatprep.mubr.f32.mxu0 %v644_v30  ;;  %3181 = vmatpush3.bf16.msra.mxu0 %v3178_v62  ;;  %v4630_v59 = vand.u32 4294901760, %v4629_v46  ;;  %v2437_v62 = vld [vmem:[%s4586_s5] ss:$0 sm:$0xff] }
 0x138   : > { %3183 = vmatprep.subr.bf16.mxu0 %v3182_v23 }
 0x139   : > { %v3202_v30 = vpack.c.bf16 %v4630_v59, %v4628_v2 }
 0x13a   : > { %2833 = vmatmul.mubr.f32.gmra.mrb[4].mxu0 %v654_v41 }
 0x13b   : > { %2835 = vmatprep.mubr.f32.mxu0 %v664_v57  ;;  %3185 = vmatpush3.bf16.msra.mxu0 %v3182_v23 }
 0x13c   : > { %3187 = vmatprep.subr.bf16.mxu0 %v3186_v14 }
 0x13e   : > { %2836 = vmatmul.mubr.f32.gmra.mrb[6].mxu0 %v674_v39 }
 0x13f   : > { %3189 = vmatpush3.bf16.msra.mxu0 %v3186_v14  ;;  %2870 = vmatprep.mubr.f32.mxu0 %v4113_v25 }
 0x140   : > { %3191 = vmatprep.subr.bf16.mxu0 %v3190_v27 }
 0x143   : > { %3193 = vmatpush3.bf16.msra.mxu0 %v3190_v27 }
 0x144   : > { %3195 = vmatprep.subr.bf16.mxu0 %v3194_v19 }
 0x147   : > { %3197 = vmatpush3.bf16.msra.mxu0 %v3194_v19 }
 0x148   : > { %3199 = vmatprep.subr.bf16.mxu0 %v3198_v63 }
 0x14b   : > { %3201 = vmatpush3.bf16.msra.mxu0 %v3198_v63 }
 0x14c   : > { %3203 = vmatprep.subr.bf16.mxu0 %v3202_v30 }
 0x14f   : > { %3205 = vmatpush3.bf16.msra.mxu0 %v3202_v30 }
 0x150   : > { %3207 = vmatprep.subr.bf16.mxu0 %v3852_v48 }
 0x152   : > { %2871 = vmatmul.mubr.f32.vlgmr.msra.gmra.mrb[0].mxu0 %v4127_v61 }
 0x153   : > { %2873 = vmatprep.mubr.f32.mxu0 %v4145_v15  ;;  %3209 = vmatpush3.bf16.msra.mxu0 %v3852_v48  ;;  %v1471_v48 = vld [vmem:[%s4587_s6] sm:$0xff] }
 0x154   : > { %3211 = vmatprep.subr.bf16.mxu0 %v3932_v40  ;;  %v1508_v11 = vand.u32 4294901760, %v1471_v48 }
 0x156   : > { %2874 = vmatmul.mubr.f32.gmra.mrb[2].mxu0 %v4156_v51 }
 0x157   : > { %2876 = vmatprep.mubr.f32.mxu0 %v4179_v0  ;;  %3213 = vmatpush3.bf16.msra.mxu0 %v3932_v40  ;;  %v1472_v40 = vld [vmem:[%s4587_s6 + $0x8] sm:$0xff] }
 0x158   : > { %3215 = vmatprep.subr.bf16.mxu0 %v3970_v6  ;;  %v1511_v12 = vand.u32 4294901760, %v1472_v40 }
 0x15a   : > { %2877 = vmatmul.mubr.f32.gmra.mrb[4].mxu0 %v4190_v29  ;;  %v4357_v36 = vpack.c.bf16 %v1511_v12, %v1508_v11 }
 0x15b   : > { %2879 = vmatprep.mubr.f32.mxu0 %v4213_v16  ;;  %3217 = vmatpush3.bf16.msra.mxu0 %v3970_v6 }
 0x15c   : > { %3219 = vmatprep.subr.bf16.mxu0 %v3997_v56  ;;  %3239 = vmatprep.subr.bf16.mxu1 %v4357_v36 }
 0x15d   : > { %3241 = vmatpush3.bf16.msra.mxu1 %v4357_v36 }
 0x15e   : > { %2880 = vmatmul.mubr.f32.gmra.mrb[6].mxu0 %v4222_v22 }
 0x15f   : > { %3221 = vmatpush3.bf16.msra.mxu0 %v3997_v56  ;;  %2914 = vmatprep.mubr.f32.mxu0 %v4113_v25  ;;  %v1474_v56 = vld [vmem:[%s4587_s6 + $0x18] sm:$0xff] }
 0x160   : > { %3223 = vmatprep.subr.bf16.mxu0 %v4017_v33 }
 0x163   : > { %3225 = vmatpush3.bf16.msra.mxu0 %v4017_v33  ;;  %v1514_v33 = vand.u32 4294901760, %v1473_v32 }
 0x164   : > { %3227 = vmatprep.subr.bf16.mxu0 %v4031_v54 }
 0x165   : > { %v1672_v35 = vsub.f32 %v1473_v32, %v1514_v33 }
 0x167   : > { %3229 = vmatpush3.bf16.msra.mxu0 %v4031_v54  ;;  %v1517_v54 = vand.u32 4294901760, %v1474_v56  ;;  %v1673_v17 = vand.u32 4294901760, %v1672_v35 }
 0x168   : > { %3231 = vmatprep.subr.bf16.mxu0 %v4035_v58 }
 0x169   : > { %v1679_v50 = vsub.f32 %v1474_v56, %v1517_v54  ;;  %v1674_v43 = vsub.f32 %v1672_v35, %v1673_v17 }
 0x16b   : > { %3233 = vmatpush3.bf16.msra.mxu0 %v4035_v58  ;;  %v4367_v58 = vpack.c.bf16 %v1517_v54, %v1514_v33  ;;  %v1680_v38 = vand.u32 4294901760, %v1679_v50  ;;  %v1675_v47 = vand.u32 4294901760, %v1674_v43  ;;  %v4378_v4 = vpack.c.bf16 %v1679_v50, %v1672_v35 }
 0x16c   : > { %3235 = vmatprep.subr.bf16.mxu0 %v4044_v7 }
 0x16d   : > { %3243 = vmatprep.subr.bf16.mxu1 %v4367_v58  ;;  %v1681_v22 = vsub.f32 %v1679_v50, %v1680_v38  ;;  %v4382_v55 = vpack.c.bf16 %v1680_v38, %v1673_v17 }
 0x16e   : > { %3245 = vmatpush3.bf16.msra.mxu1 %v4367_v58 }
 0x16f   : > { %3237 = vmatpush3.bf16.msra.mxu0 %v4044_v7  ;;  %v1682_v57 = vand.u32 4294901760, %v1681_v22 }
 0x171   : > { %v4374_v49 = vpack.c.bf16 %v1682_v57, %v1675_v47 }
 0x172   : > { %2915 = vmatmul.mubr.f32.vlgmr.msra.gmra.mrb[0].mxu0 %v4127_v61  ;;  %v1658_v61 = vsub.f32 %v1471_v48, %v1508_v11 }
 0x173   : > { %2917 = vmatprep.mubr.f32.mxu0 %v4145_v15  ;;  %v1665_v15 = vsub.f32 %v1472_v40, %v1511_v12 }
 0x175   : > { %v1666_v0 = vand.u32 4294901760, %v1665_v15  ;;  %v4376_v39 = vpack.c.bf16 %v1665_v15, %v1658_v61 }
 0x176   : > { %2918 = vmatmul.mubr.f32.gmra.mrb[2].mxu0 %v4156_v51  ;;  %v1659_v51 = vand.u32 4294901760, %v1658_v61 }
 0x177   : > { %v1667_v24 = vsub.f32 %v1665_v15, %v1666_v0 }
 0x178   : > { %v1660_v29 = vsub.f32 %v1658_v61, %v1659_v51  ;;  %v4380_v3 = vpack.c.bf16 %v1666_v0, %v1659_v51 }
 0x179   : > { %v1668_v41 = vand.u32 4294901760, %v1667_v24 }
 0x17a   : > { %v1661_v1 = vand.u32 4294901760, %v1660_v29 }
 0x17c   : > { %v4371_v45 = vpack.c.bf16 %v1668_v41, %v1661_v1 }
 0x17e   : > { %3247 = vmatprep.subr.bf16.mxu1 %v4371_v45 }
 0x1cc   : > { %v4353_v5 = vpop.f32.mrb[0].mxu1 }
 0x1cd   : > { %v4355_v6 = vpop.f32.mrb[1].mxu1  ;;  %v619_v59 = vadd.f32 %v4353_v5, %v2437_v62 }
 0x1ce   : > { %v609_v30 = vadd.f32 %v2437_v62, %v4355_v6 }
 0x1d4   : > { %v2699_v7 = vpop.f32.mrb[2].mxu1 }
 0x1d5   : > { %v628_v25 = vpop.f32.mrb[3].mxu1  ;;  %v639_v54 = vadd.f32 %v2699_v7, %v2437_v62 }
 0x1d6   : > { %v629_v15 = vadd.f32 %v2437_v62, %v628_v25 }
 0x1dc   : > { %v2702_v16 = vpop.f32.mrb[4].mxu1 }
 0x1dd   : > { %v648_v26 = vpop.f32.mrb[5].mxu1  ;;  %v659_v8 = vadd.f32 %v2702_v16, %v2437_v62 }
 0x1de   : > { %v649_v10 = vadd.f32 %v2437_v62, %v648_v26 }
 0x1e4   : > { %v2705_v28 = vpop.f32.mrb[6].mxu1 }
 0x1e5   : > { %v668_v13 = vpop.f32.mrb[7].mxu1  ;;  %v679_v34 = vadd.f32 %v2705_v28, %v2437_v62 }
 0x1e6   : > { %v669_v27 = vadd.f32 %v2437_v62, %v668_v13 }
 0x1ed   : > { %v2922_v60 = vpop.f32.mrb[8].mxu1 }
 0x1ee   : > { %v1441_v31 = vpop.f32.mrb[9].mxu1 }
 0x1f1   : > { %v2925_v42 = vpop.f32.mrb[10].mxu1 }
 0x1f2   : > { %v1453_v9 = vpop.f32.mrb[11].mxu1 }
 0x22d   : > { %v2878_v23 = vpop.f32.mrb[4].mxu0 }
 0x22e   : > { %v3311_v20 = vadd.f32 %v2878_v23, %v659_v8  ;;  %v1312_v21 = vpop.f32.mrb[5].mxu0 }
 0x22f   : > { %v3314_v14 = vadd.f32 %v1312_v21, %v649_v10 }
 0x230   : > { %v3312_v37 = vadd.f32 %v3311_v20, %v2922_v60 }
 0x231   : > { %v3315_v52 = vadd.f32 %v3314_v14, %v1441_v31  ;;  %v2881_v53 = vpop.f32.mrb[6].mxu0 }
 0x232   : > { %v3317_v19 = vadd.f32 %v2881_v53, %v679_v34  ;;  %v1324_v44 = vpop.f32.mrb[7].mxu0  ;;  %v1468_v40 = vmax.f32 %v3312_v37, 0.0 }
 0x233   : > { %v3320_v18 = vadd.f32 %v1324_v44, %v669_v27  ;;  %v1467_v46 = vmax.f32 %v3315_v52, 0.0 }
 0x234   : > { %v3318_v63 = vadd.f32 %v3317_v19, %v2925_v42  ;;  %v1499_v24 = vsel %vm1482_vm0, %v1468_v40, 0 }
 0x235   : > { %v3321_v2 = vadd.f32 %v3320_v18, %v1453_v9  ;;  %v1496_v11 = vsel %vm1482_vm0, %v1467_v46, 0  ;;  %v4400_v16 = vand.u32 4294901760, %v1499_v24 }
 0x236   : > { %v4390_v51 = vand.u32 4294901760, %v1496_v11  ;;  %v1470_v5 = vmax.f32 %v3318_v63, 0.0 }
 0x237   : > { %v1469_v56 = vmax.f32 %v3321_v2, 0.0  ;;  %v4423_v8 = vsub.f32 %v1499_v24, %v4400_v16 }
 0x238   : > { %v4403_v26 = vsub.f32 %v1496_v11, %v4390_v51  ;;  %v1505_v47 = vsel %vm1482_vm0, %v1470_v5, 0 }
 0x239   : > { %v1502_v1 = vsel %vm1482_vm0, %v1469_v56, 0  ;;  %v4425_v10 = vand.u32 4294901760, %v1505_v47  ;;  %v1628_v63 = vand.u32 4294901760, %v4423_v8 }
 0x23a   : > { %v4409_v57 = vand.u32 4294901760, %v1502_v1  ;;  %v1618_v37 = vand.u32 4294901760, %v4403_v26 }
 0x23b   : > { %v4443_v19 = vsub.f32 %v1505_v47, %v4425_v10  ;;  %v1629_v40 = vsub.f32 %v4423_v8, %v1628_v63  ;;  %v2305_v47 = vld [vmem:[%s3723_s25 + $0x20] sm:$0xff] }
 0x23c   : > { %v4434_v21 = vsub.f32 %v1502_v1, %v4409_v57  ;;  %v1619_v46 = vsub.f32 %v4403_v26, %v1618_v37  ;;  %v2303_v1 = vld [vmem:[%s3723_s25 + $0x10] sm:$0xff] }
 0x23d   : > { %v1648_v11 = vand.u32 4294901760, %v4443_v19  ;;  %v1630_v56 = vand.u32 4294901760, %v1629_v40 }
 0x245   : > { %v2916_v48 = vpop.f32.mrb[0].mxu0 }
 0x246   : > { %v3303_v12 = vadd.f32 %v2916_v48, %v619_v59  ;;  %v1417_v32 = vpop.f32.mrb[1].mxu0  ;;  %v1638_v59 = vand.u32 4294901760, %v4434_v21 }
 0x247   : > { %v3305_v33 = vadd.f32 %v1417_v32, %v609_v30 }
 0x248   : > { %v1464_v61 = vmax.f32 %v3303_v12, 0.0  ;;  %v1620_v12 = vand.u32 4294901760, %v1619_v46  ;;  %v1639_v32 = vsub.f32 %v4434_v21, %v1638_v59 }
 0x249   : > { %v1463_v0 = vmax.f32 %v3305_v33, 0.0  ;;  %v2919_v29 = vpop.f32.mrb[2].mxu0  ;;  %v1649_v33 = vsub.f32 %v4443_v19, %v1648_v11 }
 0x24a   : > { %v1487_v6 = vsel %vm1482_vm0, %v1464_v61, 0  ;;  %v3307_v35 = vadd.f32 %v2919_v29, %v639_v54  ;;  %v1429_v50 = vpop.f32.mrb[3].mxu0  ;;  %v2301_v61 = vld [vmem:[%s3723_s25] sm:$0xff] }
 0x24b   : > { %v4395_v41 = vand.u32 4294901760, %v1487_v6  ;;  %v1484_v17 = vsel %vm1482_vm0, %v1463_v0, 0  ;;  %v3309_v7 = vadd.f32 %v1429_v50, %v629_v15  ;;  %v1650_v54 = vand.u32 4294901760, %v1649_v33 }
 0x24c   : > { %v4398_v38 = vand.u32 4294901760, %v1484_v17  ;;  %v1466_v25 = vmax.f32 %v3307_v35, 0.0 }
 0x24d   : > { %v4406_v43 = vsub.f32 %v1487_v6, %v4395_v41  ;;  %v1465_v22 = vmax.f32 %v3309_v7, 0.0  ;;  %v2304_v6 = vld [vmem:[%s3723_s25 + $0x18] sm:$0xff] }
 0x24e   : > { %v4412_v28 = vsub.f32 %v1484_v17, %v4398_v38  ;;  %v1493_v13 = vsel %vm1482_vm0, %v1466_v25, 0 }
 0x24f   : > { %v1588_v60 = vand.u32 4294901760, %v4406_v43  ;;  %v4416_v31 = vand.u32 4294901760, %v1493_v13  ;;  %v1490_v42 = vsel %vm1482_vm0, %v1465_v22, 0 }
 0x250   : > { %v4419_v9 = vand.u32 4294901760, %v1490_v42  ;;  %v1578_v62 = vand.u32 4294901760, %v4412_v28 }
 0x251   : > { %v1589_v23 = vsub.f32 %v4406_v43, %v1588_v60  ;;  %v4431_v20 = vsub.f32 %v1493_v13, %v4416_v31 }
 0x252   : > { %v1597_v14 = vsub.f32 %v1490_v42, %v4419_v9  ;;  %v1579_v34 = vsub.f32 %v4412_v28, %v1578_v62 }
 0x253   : > { %v1608_v27 = vand.u32 4294901760, %v4431_v20  ;;  %v1590_v44 = vand.u32 4294901760, %v1589_v23 }
 0x254   : > { %v1580_v52 = vand.u32 4294901760, %v1579_v34  ;;  %v1598_v53 = vand.u32 4294901760, %v1597_v14 }
 0x255   : > { %v1609_v18 = vsub.f32 %v4431_v20, %v1608_v27 }
 0x256   : > { %2934 = vmatprep.mubr.f32.mxu1 %v1580_v52  ;;  %v1599_v2 = vsub.f32 %v1597_v14, %v1598_v53 }
 0x257   : > { %2935 = vmatmul.mubr.f32.vlgmr.msra.gmra.mrb[12].mxu1 %v1590_v44  ;;  %v1610_v48 = vand.u32 4294901760, %v1609_v18 }
 0x258   : > { %3249 = vmatpush3.bf16.msra.mxu1 %v4371_v45  ;;  %v1600_v30 = vand.u32 4294901760, %v1599_v2  ;;  %v1640_v45 = vand.u32 4294901760, %v1639_v32 }
 0x259   : > { %3251 = vmatprep.subr.bf16.mxu1 %v4374_v49 }
 0x25a   : > { %2937 = vmatprep.mubr.f32.mxu1 %v1600_v30 }
 0x25b   : > { %2938 = vmatmul.mubr.f32.gmra.mrb[14].mxu1 %v1610_v48 }
 0x25c   : > { %2940 = vmatprep.mubr.f32.mxu1 %v1620_v12  ;;  %3253 = vmatpush3.bf16.msra.mxu1 %v4374_v49 }
 0x25d   : > { %3255 = vmatprep.subr.bf16.mxu1 %v4376_v39 }
 0x25f   : > { %2941 = vmatmul.mubr.f32.gmra.mrb[16].mxu1 %v1630_v56 }
 0x260   : > { %2943 = vmatprep.mubr.f32.mxu1 %v1640_v45 }
 0x263   : > { %2944 = vmatmul.mubr.f32.gmra.mrb[18].mxu1 %v1650_v54 }
 0x264   : > { %2954 = vmatprep.mubr.f32.mxu1 %v4398_v38 }
 0x267   : > { %2955 = vmatmul.mubr.f32.vlgmr.msra.gmra.mrb[12].mxu1 %v4395_v41 }
 0x268   : > { %3257 = vmatpush3.bf16.msra.mxu1 %v4376_v39  ;;  %2957 = vmatprep.mubr.f32.mxu1 %v4419_v9 }
 0x269   : > { %3259 = vmatprep.subr.bf16.mxu1 %v4378_v4 }
 0x26b   : > { %2958 = vmatmul.mubr.f32.gmra.mrb[14].mxu1 %v4416_v31 }
 0x26c   : > { %2960 = vmatprep.mubr.f32.mxu1 %v4390_v51  ;;  %3261 = vmatpush3.bf16.msra.mxu1 %v4378_v4  ;;  %v2302_v4 = vld [vmem:[%s3723_s25 + $0x8] sm:$0xff] }
 0x26d   : > { %3263 = vmatprep.subr.bf16.mxu1 %v4357_v36 }
 0x26f   : > { %2961 = vmatmul.mubr.f32.gmra.mrb[16].mxu1 %v4400_v16 }
 0x270   : > { %2963 = vmatprep.mubr.f32.mxu1 %v4409_v57 }
 0x273   : > { %2964 = vmatmul.mubr.f32.gmra.mrb[18].mxu1 %v4425_v10 }
 0x274   : > { %2974 = vmatprep.mubr.f32.mxu1 %v4412_v28 }
 0x277   : > { %2975 = vmatmul.mubr.f32.vlgmr.msra.gmra.mrb[12].mxu1 %v4406_v43 }
 0x278   : > { %3265 = vmatpush3.bf16.msra.mxu1 %v4357_v36  ;;  %2977 = vmatprep.mubr.f32.mxu1 %v1597_v14 }
 0x279   : > { %3267 = vmatprep.subr.bf16.mxu1 %v4367_v58 }
 0x27b   : > { %2978 = vmatmul.mubr.f32.gmra.mrb[14].mxu1 %v4431_v20 }
 0x27c   : > { %2980 = vmatprep.mubr.f32.mxu1 %v4403_v26  ;;  %3269 = vmatpush3.bf16.msra.mxu1 %v4367_v58  ;;  %v2306_v26 = vld [vmem:[%s3723_s25 + $0x28] sm:$0xff] }
 0x27d   : > { %3271 = vmatprep.subr.bf16.mxu1 %v4380_v3 }
 0x27f   : > { %2981 = vmatmul.mubr.f32.gmra.mrb[16].mxu1 %v4423_v8 }
 0x280   : > { %2983 = vmatprep.mubr.f32.mxu1 %v4434_v21 }
 0x283   : > { %2984 = vmatmul.mubr.f32.gmra.mrb[18].mxu1 %v4443_v19 }
 0x284   : > { %2994 = vmatprep.mubr.f32.mxu1 %v1578_v62 }
 0x287   : > { %2995 = vmatmul.mubr.f32.vlgmr.msra.gmra.mrb[12].mxu1 %v1588_v60 }
 0x288   : > { %3273 = vmatpush3.bf16.msra.mxu1 %v4380_v3  ;;  %2997 = vmatprep.mubr.f32.mxu1 %v1598_v53 }
 0x289   : > { %3275 = vmatprep.subr.bf16.mxu1 %v4382_v55 }
 0x28b   : > { %2998 = vmatmul.mubr.f32.gmra.mrb[14].mxu1 %v1608_v27 }
 0x28c   : > { %3000 = vmatprep.mubr.f32.mxu1 %v1618_v37  ;;  %3277 = vmatpush3.bf16.msra.mxu1 %v4382_v55 }
 0x28d   : > { %3279 = vmatprep.subr.bf16.mxu1 %v4357_v36 }
 0x28f   : > { %3001 = vmatmul.mubr.f32.gmra.mrb[16].mxu1 %v1628_v63 }
 0x290   : > { %3003 = vmatprep.mubr.f32.mxu1 %v1638_v59 }
 0x293   : > { %3004 = vmatmul.mubr.f32.gmra.mrb[18].mxu1 %v1648_v11 }
 0x294   : > { %3014 = vmatprep.mubr.f32.mxu1 %v4398_v38 }
 0x297   : > { %3015 = vmatmul.mubr.f32.vlgmr.msra.gmra.mrb[12].mxu1 %v4395_v41 }
 0x298   : > { %3281 = vmatpush3.bf16.msra.mxu1 %v4357_v36  ;;  %3017 = vmatprep.mubr.f32.mxu1 %v4419_v9  ;;  %v2438_v36 = vld [vmem:[%s4588_s7] ss:$0 sm:$0xff] }
 0x299   : > { %3283 = vmatprep.subr.bf16.mxu1 %v4367_v58 }
 0x29b   : > { %3018 = vmatmul.mubr.f32.gmra.mrb[14].mxu1 %v4416_v31 }
 0x29c   : > { %3020 = vmatprep.mubr.f32.mxu1 %v4390_v51  ;;  %3285 = vmatpush3.bf16.msra.mxu1 %v4367_v58 }
 0x29f   : > { %3021 = vmatmul.mubr.f32.gmra.mrb[16].mxu1 %v4400_v16 }
 0x2a0   : > { %3023 = vmatprep.mubr.f32.mxu1 %v4409_v57 }
 0x2a3   : > { %3024 = vmatmul.mubr.f32.gmra.mrb[18].mxu1 %v4425_v10 }
 0x2a4   : > { %3034 = vmatprep.mubr.f32.mxu1 %v4398_v38 }
 0x2a7   : > { %3035 = vmatmul.mubr.f32.vlgmr.msra.gmra.mrb[12].mxu1 %v4395_v41 }
 0x2a8   : > { %3037 = vmatprep.mubr.f32.mxu1 %v4419_v9  ;;  %v2308_v9 = vld [vmem:[%s3723_s25 + $0x38] sm:$0xff] }
 0x2ab   : > { %3038 = vmatmul.mubr.f32.gmra.mrb[14].mxu1 %v4416_v31 }
 0x2ac   : > { %3040 = vmatprep.mubr.f32.mxu1 %v4390_v51 }
 0x2af   : > { %3041 = vmatmul.mubr.f32.gmra.mrb[16].mxu1 %v4400_v16 }
 0x2b0   : > { %3043 = vmatprep.mubr.f32.mxu1 %v4409_v57 }
 0x2b3   : > { %3044 = vmatmul.mubr.f32.gmra.mrb[18].mxu1 %v4425_v10  ;;  %v2307_v10 = vld [vmem:[%s3723_s25 + $0x30] sm:$0xff]  ;;  %s3565_s25 = smov [#allocation5]  }
 0x2b4   : > { %s3498_s20 = sshll.u32 %s3565_s25, 4  ;;  %s3499_s20 = int_to_ptr.vmem [resolvable:$false] %s3498_s20 }
 0x2b5   : > { %s3500_s26 = scalar_lea.vmem %s3499_s20, 2048  ;;  %p3501_p10 = scmp.lt.s32.totalorder %s4529_s23, %s3499_s20 }
 0x2b6   : > { %p3502_p0 = scmp.lt.s32.totalorder %s3500_s26, %s3494_s24 }
 0x2b8   : > { %p3503_p2 = por %p3502_p0, %p3501_p10 }
 0x2ba   : > { %p3504_p4 = pnand %p3503_p2, %p3497_p8 }
 0x37a   : > { %v3036_v58 = vpop.f32.mrb[12].mxu1 }
 0x37b   : > { %v3322_v49 = vadd.f32 %v3036_v58, %v2438_v36  ;;  %v2247_v39 = vpop.f32.mrb[13].mxu1 }
 0x37c   : > { %v3323_v3 = vadd.f32 %v2438_v36, %v2247_v39 }
 0x37d   : > { %v2294_v55 = vmul.f32 0.5, %v3322_v49 }
 0x37e   : > { %v2293_v15 = vmul.f32 0.5, %v3323_v3  ;;  %v3039_v51 = vpop.f32.mrb[14].mxu1 }
 0x37f   : > { %v2310_v0 = vadd.f32 %v2302_v4, %v2294_v55  ;;  %v3324_v29 = vadd.f32 %v3039_v51, %v2438_v36  ;;  %v2259_v24 = vpop.f32.mrb[15].mxu1 }
 0x380   : > { %v2309_v5 = vadd.f32 %v2301_v61, %v2293_v15  ;;  %v3325_v35 = vadd.f32 %v2438_v36, %v2259_v24 }
 0x381   : > { %2318 = vst [vmem:[%s4515_s16 + $0x8] sm:$0xff] %v2310_v0  ;;  %v2296_v50 = vmul.f32 0.5, %v3324_v29 }
 0x382   : > { %2317 = vst [vmem:[%s4515_s16] sm:$0xff] %v2309_v5  ;;  %v2295_v41 = vmul.f32 0.5, %v3325_v35  ;;  %v3042_v17 = vpop.f32.mrb[16].mxu1 }
 0x383   : > { %v2312_v7 = vadd.f32 %v2304_v6, %v2296_v50  ;;  %v3326_v38 = vadd.f32 %v3042_v17, %v2438_v36  ;;  %v2271_v25 = vpop.f32.mrb[17].mxu1 }
 0x384   : > { %v2311_v16 = vadd.f32 %v2303_v1, %v2295_v41  ;;  %v3327_v43 = vadd.f32 %v2438_v36, %v2271_v25 }
 0x385   : > { %2320 = vst [vmem:[%s4515_s16 + $0x18] sm:$0xff] %v2312_v7  ;;  %v2298_v22 = vmul.f32 0.5, %v3326_v38 }
 0x386   : > { %2319 = vst [vmem:[%s4515_s16 + $0x10] sm:$0xff] %v2311_v16  ;;  %v2297_v57 = vmul.f32 0.5, %v3327_v43  ;;  %v3045_v28 = vpop.f32.mrb[18].mxu1 }
 0x387   : > { %v2314_v13 = vadd.f32 %v2306_v26, %v2298_v22  ;;  %v3328_v60 = vadd.f32 %v3045_v28, %v2438_v36  ;;  %v2283_v31 = vpop.f32.mrb[19].mxu1 }
 0x388   : > { %v2313_v42 = vadd.f32 %v2305_v47, %v2297_v57  ;;  %v3329_v62 = vadd.f32 %v2438_v36, %v2283_v31 }
 0x389   : > { %2322 = vst [vmem:[%s4515_s16 + $0x28] sm:$0xff] %v2314_v13  ;;  %v2300_v8 = vmul.f32 0.5, %v3328_v60 }
 0x38a   : > { %2321 = vst [vmem:[%s4515_s16 + $0x20] sm:$0xff] %v2313_v42  ;;  %v2299_v23 = vmul.f32 0.5, %v3329_v62 }
 0x38b   : > { %v2316_v20 = vadd.f32 %v2308_v9, %v2300_v8 }
 0x38c   : > { %v2315_v21 = vadd.f32 %v2307_v10, %v2299_v23 }
 0x38d   : > { %2324 = vst [vmem:[%s4515_s16 + $0x38] sm:$0xff] %v2316_v20 }
 0x38e   : > { %2323 = vst [vmem:[%s4515_s16 + $0x30] sm:$0xff] %v2315_v21 }
 0x38f   : > { %3507 = shalt.err (!%p3504_p4)
}
 0x390   : > { %s3508_s10 = scalar_lea.hbm %s4535_s19, 1024  ;;  %s3512_s15 = scalar_lea.hbm %s4589_s8, 2048 }
 0x391   : > { %p3509_p5 = scmp.ne.s32.totalorder %s4535_s19, %s3508_s10  ;;  %p3513_p1 = scmp.lt.u32.totalorder %s4535_s19, %s4589_s8 }
 0x392   : > { %p3514_p3 = scmp.lt.u32.totalorder %s3512_s15, %s3508_s10  ;;  %p3516_p6 = scmp.lt.u32.totalorder %s3508_s10, %s4535_s19 }
 0x393   : > { %p3510_p7 = pnand %p3509_p5, %p4631_p12 }
 0x394   : > { %p3515_p11 = por %p3514_p3, %p3513_p1 }
 0x395   : > { %p3511_p9 = pneg %p3510_p7 }
 0x396   : > { %p3517_p13 = por %p3516_p6, %p3515_p11 }
 0x398   : > { %p3518_p8 = pnand %p3517_p13, %p3511_p9 }
 0x39a   : > { %3521 = shalt.err (!%p3518_p8)
}
 0x39b   : > { %s3566_s24 = smov 128   ;;  %s3567_s25 = smov 8  }
 0x39c   : > { %3400 = dma.vmem_to_hbm [thread:$0]  (%p4631_p12), %s4529_s23, 1024, %s4535_s19, %s2326_s9, %s3566_s24, %s3566_s24, %s3567_s25  }
 0x39d PF: > { %s2354_s20 = sand.u32 1, %s3548_s27   ;;  %p4632_p10 = scmp.ne.s32.totalorder %s4611_s18, 0 }
 0x39e   : > { %p4633_p0 = scmp.ge.s32.totalorder %s3560_s30, 2  ;;  %s2355_s26 = scalar_lea.sflag [#allocation4], %s2354_s20 }
 0x3a0   : > { %p3407_p2 = pnand %p4633_p0, %p4632_p10 }
 0x3a2   : > { %3543 = dma.done.wait (!%p3407_p2), %s2355_s26, 1024  }
 0x3a3   : > { %3545 = vsyncadd (!%p3407_p2), %s2355_s26, 4294966272  ;;  %p21_p4 = scmp.ge.s32.totalorder %s3638_s11, 4   ;;  %s4634_s27 = smov %s3552_s28 }
 0x3a4   : > { %s4635_s28 = smov %s3556_s29  ;;  %s4636_s29 = smov %s3650_s14 }
 0x3a5   : > { %s4637_s30 = smov %s3638_s11  ;;  %23 = sbr.rel (!%p21_p4) target bundleno = 5 (0x5), region = 100 }
 0x3ac   :  { %2360 = vsyncpa [#allocation3], 1 }
 0x3ad   :  { %2362 = vsyncpa [#allocation3 + $0x1], 1 }
 0x3ae   :  { %2363 = vsyncpa [#allocation4], 1 }
 0x3af   :  { %2365 = vsyncpa [#allocation4 + $0x1], 1 }

</bundles_post_ra>
